<compile_context>
chip_gen: v7x
topology: tpu7x:2x2x1
jax: 0.10.0
libtpu: 0.0.40
codegen_flags: <defaults>
</compile_context>

<pallas_src>
import functools

import jax
import jax.numpy as jnp
from jax.experimental import pallas as pl
from jax.experimental.pallas import tpu as pltpu

# Preferred tile sizes for real ViT shapes; tiny (toy) dims fall back to the
# full dimension, which always satisfies the (8, 128) block rule.
TM, TN, TK = 256, 256, 512
VMEM_LIMIT = 48 * 1024 * 1024  # fits v7x (64 MiB/TC) with headroom


def _tile(dim, pref):
    """Use the preferred tile when it divides `dim`, else the full dim."""
    return pref if dim % pref == 0 else dim


def _erf_f32(x):
    """float32-accurate erf (A&S 7.1.26, |err| < 1.5e-7) from Mosaic-safe ops."""
    a1, a2, a3, a4, a5 = (0.254829592, -0.284496736, 1.421413741,
                          -1.453152027, 1.061405429)
    p = 0.3275911
    ax = jnp.abs(x)
    t = 1.0 / (1.0 + p * ax)
    poly = ((((a5 * t + a4) * t + a3) * t + a2) * t + a1) * t
    y = 1.0 - poly * jnp.exp(-ax * ax)
    return jnp.where(x >= 0.0, y, -y)


def _gelu_exact(h):
    # nn.GELU() default = exact erf GELU (f32 math).
    return 0.5 * h * (1.0 + _erf_f32(h * 0.7071067811865476))


# --------------------------- Pallas kernels ---------------------------------

def _linear_kernel(x_ref, w_ref, *rest, activation, has_bias):
    """Tiled matmul with optional bias and GELU epilogue; f32 accumulation."""
    if has_bias:
        b_ref, o_ref, acc_ref = rest
    else:
        b_ref = None
        o_ref, acc_ref = rest

    @pl.when(pl.program_id(2) == 0)
    def _():
        acc_ref[...] = jnp.zeros_like(acc_ref)

    acc_ref[...] += jnp.dot(x_ref[...], w_ref[...],
                            preferred_element_type=jnp.float32)

    @pl.when(pl.program_id(2) == pl.num_programs(2) - 1)
    def _():
        h = acc_ref[...]
        if has_bias:
            h = h + b_ref[...].astype(jnp.float32)
        if activation == "gelu":
            h = _gelu_exact(h)
        o_ref[...] = h.astype(o_ref.dtype)


def linear(x, w, b=None, activation="none", out_dtype=jnp.bfloat16):
    """x: (M, K) bf16, w: (K, N) bf16, b: (1, N) f32 or None -> (M, N)."""
    M, K = x.shape
    N = w.shape[1]
    tm, tn, tk = _tile(M, TM), _tile(N, TN), _tile(K, TK)
    grid = (M // tm, N // tn, K // tk)

    in_specs = [pl.BlockSpec((tm, tk), lambda i, j, k: (i, k)),
                pl.BlockSpec((tk, tn), lambda i, j, k: (k, j))]
    args = [x, w]
    if b is not None:
        in_specs.append(pl.BlockSpec((1, tn), lambda i, j, k: (0, j)))
        args.append(b)

    return pl.pallas_call(
        functools.partial(_linear_kernel, activation=activation,
                          has_bias=b is not None),
        out_shape=jax.ShapeDtypeStruct((M, N), out_dtype),
        grid=grid,
        in_specs=in_specs,
        out_specs=pl.BlockSpec((tm, tn), lambda i, j, k: (i, j)),
        scratch_shapes=[pltpu.VMEM((tm, tn), jnp.float32)],
        compiler_params=pltpu.CompilerParams(
            dimension_semantics=("parallel", "parallel", "arbitrary"),
            vmem_limit_bytes=VMEM_LIMIT),
    )(*args)


def _linear_res_ln_kernel(x_ref, w_ref, *rest, has_bias):
    """Tiled matmul + (bias) + residual add + LayerNorm epilogue (f32)."""
    if has_bias:
        b_ref, r_ref, g_ref, be_ref, o_ref, acc_ref = rest
    else:
        b_ref = None
        r_ref, g_ref, be_ref, o_ref, acc_ref = rest

    @pl.when(pl.program_id(1) == 0)
    def _():
        acc_ref[...] = jnp.zeros_like(acc_ref)

    acc_ref[...] += jnp.dot(x_ref[...], w_ref[...],
                            preferred_element_type=jnp.float32)

    @pl.when(pl.program_id(1) == pl.num_programs(1) - 1)
    def _():
        h = acc_ref[...]
        if has_bias:
            h = h + b_ref[...].astype(jnp.float32)
        h = h + r_ref[...].astype(jnp.float32)          # residual add
        mean = jnp.mean(h, axis=-1, keepdims=True)
        c = h - mean
        var = jnp.mean(c * c, axis=-1, keepdims=True)
        y = c * jax.lax.rsqrt(var + 1e-5)
        o_ref[...] = (y * g_ref[...].astype(jnp.float32)
                      + be_ref[...].astype(jnp.float32)).astype(o_ref.dtype)


def linear_residual_layernorm(x, w, res, gamma, beta, b=None,
                              out_dtype=jnp.bfloat16):
    """LayerNorm(res + x @ w (+ b)) fused in one kernel.  N kept un-tiled
    (LayerNorm needs the full row); rows and K are tiled/accumulated."""
    M, K = x.shape
    N = w.shape[1]
    tm, tk = _tile(M, TM), _tile(K, TK)
    grid = (M // tm, K // tk)

    in_specs = [pl.BlockSpec((tm, tk), lambda i, k: (i, k)),
                pl.BlockSpec((tk, N), lambda i, k: (k, 0))]
    args = [x, w]
    if b is not None:
        in_specs.append(pl.BlockSpec((1, N), lambda i, k: (0, 0)))
        args.append(b)
    in_specs += [pl.BlockSpec((tm, N), lambda i, k: (i, 0)),
                 pl.BlockSpec((1, N), lambda i, k: (0, 0)),
                 pl.BlockSpec((1, N), lambda i, k: (0, 0))]
    args += [res, gamma, beta]

    return pl.pallas_call(
        functools.partial(_linear_res_ln_kernel, has_bias=b is not None),
        out_shape=jax.ShapeDtypeStruct((M, N), out_dtype),
        grid=grid,
        in_specs=in_specs,
        out_specs=pl.BlockSpec((tm, N), lambda i, k: (i, 0)),
        scratch_shapes=[pltpu.VMEM((tm, N), jnp.float32)],
        compiler_params=pltpu.CompilerParams(
            dimension_semantics=("parallel", "arbitrary"),
            vmem_limit_bytes=VMEM_LIMIT),
    )(*args)


def _attn_kernel(qkv_ref, o_ref, *, head_num, scale):
    """All heads of one batch element.  qkv_ref: (1, S, 3E) laid out as
    (q|k|v) x (head, d); writes the lane-dense (S, E) context in 'b t (h d)'
    layout directly."""
    qkv = qkv_ref[0]                       # (S, 3E) bf16
    S, E3 = qkv.shape
    E = E3 // 3
    dh = E // head_num
    outs = []
    for h in range(head_num):
        q = qkv[:, h * dh:(h + 1) * dh]
        k = qkv[:, E + h * dh:E + (h + 1) * dh]
        v = qkv[:, 2 * E + h * dh:2 * E + (h + 1) * dh]
        # energy = q @ k^T * sqrt(d)  (the original module MULTIPLIES by dk)
        s = jax.lax.dot_general(q, k, (((1,), (1,)), ((), ())),
                                preferred_element_type=jnp.float32) * scale
        s = s - jnp.max(s, axis=-1, keepdims=True)
        p = jnp.exp(s)
        p = p * pl.reciprocal(jnp.sum(p, axis=-1, keepdims=True), approx=True)
        outs.append(jnp.dot(p.astype(qkv.dtype), v,
                            preferred_element_type=jnp.float32))
    o_ref[0] = jnp.concatenate(outs, axis=-1).astype(o_ref.dtype)


def attention(qkv, head_num, scale, out_dtype=jnp.bfloat16):
    """qkv: (B, S, 3E) in (q|k|v)x(h d) layout -> (B, S, E) in (h d) layout."""
    B, S, E3 = qkv.shape
    E = E3 // 3
    return pl.pallas_call(
        functools.partial(_attn_kernel, head_num=head_num, scale=scale),
        out_shape=jax.ShapeDtypeStruct((B, S, E), out_dtype),
        grid=(B,),
        in_specs=[pl.BlockSpec((1, S, E3), lambda b: (b, 0, 0))],
        out_specs=pl.BlockSpec((1, S, E), lambda b: (b, 0, 0)),
        compiler_params=pltpu.CompilerParams(
            dimension_semantics=("parallel",),
            vmem_limit_bytes=VMEM_LIMIT),
    )(qkv)


# --------------------------- model glue (plain JAX) -------------------------

def multi_head_attention(z2d, p, head_num, B, S, E):
    dh = E // head_num
    scale = float(dh) ** 0.5              # self.dk (multiplied, per module)
    # qkv_w columns were pre-permuted so the output layout is (q|k|v)x(h d):
    # no (3, B, h, S, d) transpose is needed anywhere.
    qkv = linear(z2d, p["qkv_w"], b=None)                 # (B*S, 3E) bf16
    ctx = attention(qkv.reshape(B, S, 3 * E), head_num, scale)
    return ctx.reshape(B * S, E)                          # already 'b t (h d)'


def encoder_block(z2d, p, head_num, B, S, E):
    ctx = multi_head_attention(z2d, p, head_num, B, S, E)
    # TODO(synk): nn.Dropout(0.1) treated as identity (eval mode).
    # out-projection fused with residual add + LayerNorm1
    z1 = linear_residual_layernorm(ctx, p["out_w"], z2d, p["ln1_g"], p["ln1_b"])
    h = linear(z1, p["fc1_w"], p["fc1_b"], activation="gelu")
    # fc2 fused with residual add + LayerNorm2
    z2 = linear_residual_layernorm(h, p["fc2_w"], z1, p["ln2_g"], p["ln2_b"],
                                   b=p["fc2_b"])
    return z2


def vit_forward(x, params, cfg):
    B, C, H, W = x.shape
    pdim = cfg["patch_dim"]
    E = cfg["embedding_dim"]
    # einops: 'b c (patch_x x) (patch_y y) -> b (x y) (patch_x patch_y c)'
    xr = x.reshape(B, C, pdim, H // pdim, pdim, W // pdim)
    xr = jnp.transpose(xr, (0, 3, 5, 2, 4, 1))     # b, x, y, patch_x, patch_y, c
    patches = xr.reshape(B, (H // pdim) * (W // pdim), pdim * pdim * C)
    T = patches.shape[1]
    token_dim = pdim * pdim * C

    proj = linear(patches.reshape(B * T, token_dim).astype(jnp.bfloat16),
                  params["proj_w"], params["proj_b"],
                  out_dtype=jnp.float32).reshape(B, T, E)
    cls = jnp.broadcast_to(params["cls_token"], (B, 1, E))
    z = jnp.concatenate([cls, proj], axis=1) + params["embedding"][:T + 1][None]
    # TODO(synk): nn.Dropout(0.1) treated as identity (eval mode).

    S = T + 1
    z2d = z.reshape(B * S, E).astype(jnp.bfloat16)
    for blk in params["blocks"]:
        z2d = encoder_block(z2d, blk, cfg["head_num"], B, S, E)
    z = z2d.reshape(B, S, E)

    if cfg["classification"]:
        return linear(z[:, 0, :], params["head_w"], params["head_b"],
                      out_dtype=jnp.float32)
    return z[:, 1:, :].astype(jnp.float32)


# --------------------------- deterministic params ---------------------------

def init_params(key, cfg):
    E, mlp = cfg["embedding_dim"], cfg["mlp_dim"]
    num_tokens = (cfg["img_dim"] // cfg["patch_dim"]) ** 2
    token_dim = cfg["in_channels"] * cfg["patch_dim"] ** 2

    def nrm(k, shape, s=0.02):
        return (s * jax.random.normal(k, shape)).astype(jnp.float32)

    keys = iter(jax.random.split(key, 8 + 8 * cfg["block_num"]))
    params = {
        "proj_w": nrm(next(keys), (token_dim, E)),
        "proj_b": nrm(next(keys), (1, E)),
        "embedding": jax.random.uniform(next(keys), (num_tokens + 1, E),
                                        jnp.float32),
        "cls_token": nrm(next(keys), (1, 1, E), 1.0),
        "head_w": nrm(next(keys), (E, cfg["num_classes"])),
        "head_b": nrm(next(keys), (1, cfg["num_classes"])),
        "blocks": [],
    }
    for _ in range(cfg["block_num"]):
        params["blocks"].append({
            "qkv_w": nrm(next(keys), (E, 3 * E)),
            "out_w": nrm(next(keys), (E, E)),
            "ln1_g": jnp.ones((1, E), jnp.float32),
            "ln1_b": jnp.zeros((1, E), jnp.float32),
            "fc1_w": nrm(next(keys), (E, mlp)),
            "fc1_b": nrm(next(keys), (1, mlp)),
            "fc2_w": nrm(next(keys), (mlp, E)),
            "fc2_b": nrm(next(keys), (1, E)),
            "ln2_g": jnp.ones((1, E), jnp.float32),
            "ln2_b": jnp.zeros((1, E), jnp.float32),
        })
    return params


def prepare_params(params, cfg):
    """One-time (outside jit) layout/dtype prep:
    - permute qkv weight columns 'd k h' -> 'k h d' (semantics-preserving: it
      exactly implements the module's rearrange 'b t (d k h) -> k b h t d',
      with per-head d contiguous, so no runtime transposes are needed).
    - cast matmul weights to bf16 (f32 accumulation inside the kernels)."""
    E, Hn = cfg["embedding_dim"], cfg["head_num"]
    dh = E // Hn
    d_idx = jnp.arange(dh)
    cols = []
    for k in range(3):
        for h in range(Hn):
            cols.append(d_idx * (3 * Hn) + k * Hn + h)
    perm = jnp.concatenate(cols)

    out = dict(params)
    out["proj_w"] = params["proj_w"].astype(jnp.bfloat16)
    out["head_w"] = params["head_w"].astype(jnp.bfloat16)
    blocks = []
    for blk in params["blocks"]:
        nb = dict(blk)
        nb["qkv_w"] = blk["qkv_w"][:, perm].astype(jnp.bfloat16)
        nb["out_w"] = blk["out_w"].astype(jnp.bfloat16)
        nb["fc1_w"] = blk["fc1_w"].astype(jnp.bfloat16)
        nb["fc2_w"] = blk["fc2_w"].astype(jnp.bfloat16)
        blocks.append(nb)
    out["blocks"] = blocks
    return out


# --------------------------- main --------------------------------------------

if __name__ == "__main__":
    cfg = dict(img_dim=16, in_channels=4, embedding_dim=32, head_num=4,
               mlp_dim=64, block_num=2, patch_dim=4,
               classification=True, num_classes=4)

    key = jax.random.PRNGKey(0)
    kx, kp = jax.random.split(key)
    x = jax.random.normal(
        kx, (2, cfg["in_channels"], cfg["img_dim"], cfg["img_dim"]), jnp.float32)
    params = prepare_params(init_params(kp, cfg), cfg)

    fwd = jax.jit(lambda xx, pp: vit_forward(xx, pp, cfg))
    out = fwd(x, params)
    jax.block_until_ready(out)
    assert out.shape == (2, cfg["num_classes"]), out.shape
    print("KERNEL_OK")
</pallas_src>

<mosaic_0001>
module attributes {stable_mosaic.version = 11 : i64} {
  func.func @_linear_kernel(%arg0: i32, %arg1: i32, %arg2: i32, %arg3: memref<32x64xbf16, #tpu.memory_space<vmem>>, %arg4: memref<64x32xbf16, #tpu.memory_space<vmem>>, %arg5: memref<1x32xf32, #tpu.memory_space<vmem>>, %arg6: memref<32x32xf32, #tpu.memory_space<vmem>>, %arg7: memref<32x32xf32, #tpu.memory_space<vmem>>) attributes {dimension_semantics = [#tpu.dimension_semantics<parallel>, #tpu.dimension_semantics<parallel>, #tpu.dimension_semantics<arbitrary>], iteration_bounds = array<i64: 1, 1, 1>, scalar_prefetch = 0 : i64, scratch_operands = 1 : i64, tpu.core_type = #tpu.core_type<tc>, window_params = [{transform_indices = @transform_0, window_bounds = array<i64: 32, 64>}, {transform_indices = @transform_1, window_bounds = array<i64: 64, 32>}, {transform_indices = @transform_2, window_bounds = array<i64: 1, 32>}, {transform_indices = @transform_3, window_bounds = array<i64: 32, 32>}]} {
    %c0_i32 = arith.constant 0 : i32
    %0 = arith.cmpi eq, %arg2, %c0_i32 : i32
    %1 = arith.extui %0 : i1 to i32
    %c0_i32_0 = arith.constant 0 : i32
    %2 = arith.cmpi ne, %1, %c0_i32_0 : i32
    scf.if %2 {
      %cst_10 = arith.constant 0.000000e+00 : f32
      %12 = vector.broadcast %cst_10 : f32 to vector<32x32xf32>
      %c0_11 = arith.constant 0 : index
      %c0_12 = arith.constant 0 : index
      %13 = vector.load %arg7[%c0_11, %c0_12] : memref<32x32xf32, #tpu.memory_space<vmem>>, vector<32x32xf32>
      tpu.vector_store %arg7[%c0_11, %c0_12], %12 {strides = array<i32>} : memref<32x32xf32, #tpu.memory_space<vmem>>, vector<32x32xf32>,
    } else {
    }
    %c0 = arith.constant 0 : index
    %c0_1 = arith.constant 0 : index
    %3 = vector.load %arg7[%c0, %c0_1] : memref<32x32xf32, #tpu.memory_space<vmem>>, vector<32x32xf32>
    %c0_2 = arith.constant 0 : index
    %c0_3 = arith.constant 0 : index
    %4 = vector.load %arg3[%c0_2, %c0_3] : memref<32x64xbf16, #tpu.memory_space<vmem>>, vector<32x64xbf16>
    %c0_4 = arith.constant 0 : index
    %c0_5 = arith.constant 0 : index
    %5 = vector.load %arg4[%c0_4, %c0_5] : memref<64x32xbf16, #tpu.memory_space<vmem>>, vector<64x32xbf16>
    %cst = arith.constant dense<0.000000e+00> : vector<32x32xf32>
    %6 = tpu.matmul %4, %5, %cst {dimension_numbers = #tpu.dot_dimension_numbers<[1], [0], [0], [1], [0, 0, 1, 1], [], []>} : vector<32x64xbf16>, vector<64x32xbf16>, vector<32x32xf32> -> vector<32x32xf32>
    %7 = arith.addf %3, %6 : vector<32x32xf32>
    %c0_6 = arith.constant 0 : index
    %c0_7 = arith.constant 0 : index
    %8 = vector.load %arg7[%c0_6, %c0_7] : memref<32x32xf32, #tpu.memory_space<vmem>>, vector<32x32xf32>
    tpu.vector_store %arg7[%c0_6, %c0_7], %7 {strides = array<i32>} : memref<32x32xf32, #tpu.memory_space<vmem>>, vector<32x32xf32>,
    %c0_i32_8 = arith.constant 0 : i32
    %9 = arith.cmpi eq, %arg2, %c0_i32_8 : i32
    %10 = arith.extui %9 : i1 to i32
    %c0_i32_9 = arith.constant 0 : i32
    %11 = arith.cmpi ne, %10, %c0_i32_9 : i32
    scf.if %11 {
      %c0_10 = arith.constant 0 : index
      %c0_11 = arith.constant 0 : index
      %12 = vector.load %arg7[%c0_10, %c0_11] : memref<32x32xf32, #tpu.memory_space<vmem>>, vector<32x32xf32>
      %c0_12 = arith.constant 0 : index
      %c0_13 = arith.constant 0 : index
      %13 = vector.load %arg5[%c0_12, %c0_13] : memref<1x32xf32, #tpu.memory_space<vmem>>, vector<1x32xf32>
      %14 = vector.broadcast %13 : vector<1x32xf32> to vector<32x32xf32>
      %15 = arith.addf %12, %14 : vector<32x32xf32>
      %c0_14 = arith.constant 0 : index
      %c0_15 = arith.constant 0 : index
      %16 = vector.load %arg6[%c0_14, %c0_15] : memref<32x32xf32, #tpu.memory_space<vmem>>, vector<32x32xf32>
      tpu.vector_store %arg6[%c0_14, %c0_15], %15 {strides = array<i32>} : memref<32x32xf32, #tpu.memory_space<vmem>>, vector<32x32xf32>,
    } else {
    }
    return
  }
  func.func @transform_0(%arg0: i32, %arg1: i32, %arg2: i32) -> (i32, i32) {
    %c0_i32 = arith.constant 0 : i32
    return %arg0, %arg2 : i32, i32
  }
  func.func @transform_1(%arg0: i32, %arg1: i32, %arg2: i32) -> (i32, i32) {
    %c0_i32 = arith.constant 0 : i32
    return %arg2, %arg1 : i32, i32
  }
  func.func @transform_2(%arg0: i32, %arg1: i32, %arg2: i32) -> (i32, i32) {
    %c0_i32 = arith.constant 0 : i32
    %c0_i32_0 = arith.constant 0 : i32
    return %c0_i32, %arg1 : i32, i32
  }
  func.func @transform_3(%arg0: i32, %arg1: i32, %arg2: i32) -> (i32, i32) {
    %c0_i32 = arith.constant 0 : i32
    return %arg0, %arg1 : i32, i32
  }
}

module attributes {stable_mosaic.version = 11 : i64} {
  func.func @_linear_kernel(%arg0: i32, %arg1: i32, %arg2: i32, %arg3: memref<34x32xbf16, #tpu.memory_space<vmem>>, %arg4: memref<32x96xbf16, #tpu.memory_space<vmem>>, %arg5: memref<34x96xbf16, #tpu.memory_space<vmem>>, %arg6: memref<34x96xf32, #tpu.memory_space<vmem>>) attributes {dimension_semantics = [#tpu.dimension_semantics<parallel>, #tpu.dimension_semantics<parallel>, #tpu.dimension_semantics<arbitrary>], iteration_bounds = array<i64: 1, 1, 1>, scalar_prefetch = 0 : i64, scratch_operands = 1 : i64, tpu.core_type = #tpu.core_type<tc>, window_params = [{transform_indices = @transform_0, window_bounds = array<i64: 34, 32>}, {transform_indices = @transform_1, window_bounds = array<i64: 32, 96>}, {transform_indices = @transform_2, window_bounds = array<i64: 34, 96>}]} {
    %c0_i32 = arith.constant 0 : i32
    %0 = arith.cmpi eq, %arg2, %c0_i32 : i32
    %1 = arith.extui %0 : i1 to i32
    %c0_i32_0 = arith.constant 0 : i32
    %2 = arith.cmpi ne, %1, %c0_i32_0 : i32
    scf.if %2 {
      %cst_10 = arith.constant 0.000000e+00 : f32
      %12 = vector.broadcast %cst_10 : f32 to vector<34x96xf32>
      %c0_11 = arith.constant 0 : index
      %c0_12 = arith.constant 0 : index
      %13 = vector.load %arg6[%c0_11, %c0_12] : memref<34x96xf32, #tpu.memory_space<vmem>>, vector<34x96xf32>
      tpu.vector_store %arg6[%c0_11, %c0_12], %12 {strides = array<i32>} : memref<34x96xf32, #tpu.memory_space<vmem>>, vector<34x96xf32>,
    } else {
    }
    %c0 = arith.constant 0 : index
    %c0_1 = arith.constant 0 : index
    %3 = vector.load %arg6[%c0, %c0_1] : memref<34x96xf32, #tpu.memory_space<vmem>>, vector<34x96xf32>
    %c0_2 = arith.constant 0 : index
    %c0_3 = arith.constant 0 : index
    %4 = vector.load %arg3[%c0_2, %c0_3] : memref<34x32xbf16, #tpu.memory_space<vmem>>, vector<34x32xbf16>
    %c0_4 = arith.constant 0 : index
    %c0_5 = arith.constant 0 : index
    %5 = vector.load %arg4[%c0_4, %c0_5] : memref<32x96xbf16, #tpu.memory_space<vmem>>, vector<32x96xbf16>
    %cst = arith.constant dense<0.000000e+00> : vector<34x96xf32>
    %6 = tpu.matmul %4, %5, %cst {dimension_numbers = #tpu.dot_dimension_numbers<[1], [0], [0], [1], [0, 0, 1, 1], [], []>} : vector<34x32xbf16>, vector<32x96xbf16>, vector<34x96xf32> -> vector<34x96xf32>
    %7 = arith.addf %3, %6 : vector<34x96xf32>
    %c0_6 = arith.constant 0 : index
    %c0_7 = arith.constant 0 : index
    %8 = vector.load %arg6[%c0_6, %c0_7] : memref<34x96xf32, #tpu.memory_space<vmem>>, vector<34x96xf32>
    tpu.vector_store %arg6[%c0_6, %c0_7], %7 {strides = array<i32>} : memref<34x96xf32, #tpu.memory_space<vmem>>, vector<34x96xf32>,
    %c0_i32_8 = arith.constant 0 : i32
    %9 = arith.cmpi eq, %arg2, %c0_i32_8 : i32
    %10 = arith.extui %9 : i1 to i32
    %c0_i32_9 = arith.constant 0 : i32
    %11 = arith.cmpi ne, %10, %c0_i32_9 : i32
    scf.if %11 {
      %c0_10 = arith.constant 0 : index
      %c0_11 = arith.constant 0 : index
      %12 = vector.load %arg6[%c0_10, %c0_11] : memref<34x96xf32, #tpu.memory_space<vmem>>, vector<34x96xf32>
      %13 = arith.truncf %12 : vector<34x96xf32> to vector<34x96xbf16>
      %c0_12 = arith.constant 0 : index
      %c0_13 = arith.constant 0 : index
      %14 = vector.load %arg5[%c0_12, %c0_13] : memref<34x96xbf16, #tpu.memory_space<vmem>>, vector<34x96xbf16>
      tpu.vector_store %arg5[%c0_12, %c0_13], %13 {strides = array<i32>} : memref<34x96xbf16, #tpu.memory_space<vmem>>, vector<34x96xbf16>,
    } else {
    }
    return
  }
  func.func @transform_0(%arg0: i32, %arg1: i32, %arg2: i32) -> (i32, i32) {
    %c0_i32 = arith.constant 0 : i32
    return %arg0, %arg2 : i32, i32
  }
  func.func @transform_1(%arg0: i32, %arg1: i32, %arg2: i32) -> (i32, i32) {
    %c0_i32 = arith.constant 0 : i32
    return %arg2, %arg1 : i32, i32
  }
  func.func @transform_2(%arg0: i32, %arg1: i32, %arg2: i32) -> (i32, i32) {
    %c0_i32 = arith.constant 0 : i32
    return %arg0, %arg1 : i32, i32
  }
}

module attributes {stable_mosaic.version = 11 : i64} {
  func.func @_attn_kernel(%arg0: i32, %arg1: memref<1x17x96xbf16, #tpu.memory_space<vmem>>, %arg2: memref<1x17x32xbf16, #tpu.memory_space<vmem>>) attributes {dimension_semantics = [#tpu.dimension_semantics<parallel>], iteration_bounds = array<i64: 2>, scalar_prefetch = 0 : i64, scratch_operands = 0 : i64, tpu.core_type = #tpu.core_type<tc>, window_params = [{transform_indices = @transform_0, window_bounds = array<i64: 1, 17, 96>}, {transform_indices = @transform_1, window_bounds = array<i64: 1, 17, 32>}]} {
    %c0 = arith.constant 0 : index
    %c0_0 = arith.constant 0 : index
    %c0_1 = arith.constant 0 : index
    %0 = vector.load %arg1[%c0, %c0_0, %c0_1] : memref<1x17x96xbf16, #tpu.memory_space<vmem>>, vector<1x17x96xbf16>
    %1 = vector.shape_cast %0 : vector<1x17x96xbf16> to vector<17x96xbf16>
    %2 = vector.extract_strided_slice %1 {offsets = [0, 0], sizes = [17, 8], strides = [1, 1]} : vector<17x96xbf16> to vector<17x8xbf16>
    %3 = vector.extract_strided_slice %1 {offsets = [0, 32], sizes = [17, 8], strides = [1, 1]} : vector<17x96xbf16> to vector<17x8xbf16>
    %4 = vector.extract_strided_slice %1 {offsets = [0, 64], sizes = [17, 8], strides = [1, 1]} : vector<17x96xbf16> to vector<17x8xbf16>
    %cst = arith.constant dense<0.000000e+00> : vector<17x17xf32>
    %5 = tpu.matmul %2, %3, %cst {dimension_numbers = #tpu.dot_dimension_numbers<[1], [1], [0], [0], [0, 0, 1, 0], [], []>} : vector<17x8xbf16>, vector<17x8xbf16>, vector<17x17xf32> -> vector<17x17xf32>
    %cst_2 = arith.constant 2.82842708 : f32
    %6 = vector.broadcast %cst_2 : f32 to vector<17x17xf32>
    %7 = arith.mulf %5, %6 : vector<17x17xf32>
    %cst_3 = arith.constant dense<0xFF800000> : vector<17xf32>
    %8 = vector.multi_reduction <maximumf>, %7, %cst_3 [1] : vector<17x17xf32> to vector<17xf32>
    %9 = vector.shape_cast %8 : vector<17xf32> to vector<17x1xf32>
    %10 = vector.broadcast %9 : vector<17x1xf32> to vector<17x17xf32>
    %11 = arith.subf %7, %10 : vector<17x17xf32>
    %12 = math.exp %11 : vector<17x17xf32>
    %cst_4 = arith.constant dense<0.000000e+00> : vector<17xf32>
    %13 = vector.multi_reduction <add>, %12, %cst_4 [1] : vector<17x17xf32> to vector<17xf32>
    %14 = vector.shape_cast %13 : vector<17xf32> to vector<17x1xf32>
    %15 = tpu.reciprocal %14 {approx = true} : vector<17x1xf32> -> vector<17x1xf32>
    %16 = vector.broadcast %15 : vector<17x1xf32> to vector<17x17xf32>
    %17 = arith.mulf %12, %16 : vector<17x17xf32>
    %18 = arith.truncf %17 : vector<17x17xf32> to vector<17x17xbf16>
    %cst_5 = arith.constant dense<0.000000e+00> : vector<17x8xf32>
    %19 = tpu.matmul %18, %4, %cst_5 {dimension_numbers = #tpu.dot_dimension_numbers<[1], [0], [0], [1], [0, 0, 1, 1], [], []>} : vector<17x17xbf16>, vector<17x8xbf16>, vector<17x8xf32> -> vector<17x8xf32>
    %20 = vector.extract_strided_slice %1 {offsets = [0, 8], sizes = [17, 8], strides = [1, 1]} : vector<17x96xbf16> to vector<17x8xbf16>
    %21 = vector.extract_strided_slice %1 {offsets = [0, 40], sizes = [17, 8], strides = [1, 1]} : vector<17x96xbf16> to vector<17x8xbf16>
    %22 = vector.extract_strided_slice %1 {offsets = [0, 72], sizes = [17, 8], strides = [1, 1]} : vector<17x96xbf16> to vector<17x8xbf16>
    %cst_6 = arith.constant dense<0.000000e+00> : vector<17x17xf32>
    %23 = tpu.matmul %20, %21, %cst_6 {dimension_numbers = #tpu.dot_dimension_numbers<[1], [1], [0], [0], [0, 0, 1, 0], [], []>} : vector<17x8xbf16>, vector<17x8xbf16>, vector<17x17xf32> -> vector<17x17xf32>
    %cst_7 = arith.constant 2.82842708 : f32
    %24 = vector.broadcast %cst_7 : f32 to vector<17x17xf32>
    %25 = arith.mulf %23, %24 : vector<17x17xf32>
    %cst_8 = arith.constant dense<0xFF800000> : vector<17xf32>
    %26 = vector.multi_reduction <maximumf>, %25, %cst_8 [1] : vector<17x17xf32> to vector<17xf32>
    %27 = vector.shape_cast %26 : vector<17xf32> to vector<17x1xf32>
    %28 = vector.broadcast %27 : vector<17x1xf32> to vector<17x17xf32>
    %29 = arith.subf %25, %28 : vector<17x17xf32>
    %30 = math.exp %29 : vector<17x17xf32>
    %cst_9 = arith.constant dense<0.000000e+00> : vector<17xf32>
    %31 = vector.multi_reduction <add>, %30, %cst_9 [1] : vector<17x17xf32> to vector<17xf32>
    %32 = vector.shape_cast %31 : vector<17xf32> to vector<17x1xf32>
    %33 = tpu.reciprocal %32 {approx = true} : vector<17x1xf32> -> vector<17x1xf32>
    %34 = vector.broadcast %33 : vector<17x1xf32> to vector<17x17xf32>
    %35 = arith.mulf %30, %34 : vector<17x17xf32>
    %36 = arith.truncf %35 : vector<17x17xf32> to vector<17x17xbf16>
    %cst_10 = arith.constant dense<0.000000e+00> : vector<17x8xf32>
    %37 = tpu.matmul %36, %22, %cst_10 {dimension_numbers = #tpu.dot_dimension_numbers<[1], [0], [0], [1], [0, 0, 1, 1], [], []>} : vector<17x17xbf16>, vector<17x8xbf16>, vector<17x8xf32> -> vector<17x8xf32>
    %38 = vector.extract_strided_slice %1 {offsets = [0, 16], sizes = [17, 8], strides = [1, 1]} : vector<17x96xbf16> to vector<17x8xbf16>
    %39 = vector.extract_strided_slice %1 {offsets = [0, 48], sizes = [17, 8], strides = [1, 1]} : vector<17x96xbf16> to vector<17x8xbf16>
    %40 = vector.extract_strided_slice %1 {offsets = [0, 80], sizes = [17, 8], strides = [1, 1]} : vector<17x96xbf16> to vector<17x8xbf16>
    %cst_11 = arith.constant dense<0.000000e+00> : vector<17x17xf32>
    %41 = tpu.matmul %38, %39, %cst_11 {dimension_numbers = #tpu.dot_dimension_numbers<[1], [1], [0], [0], [0, 0, 1, 0], [], []>} : vector<17x8xbf16>, vector<17x8xbf16>, vector<17x17xf32> -> vector<17x17xf32>
    %cst_12 = arith.constant 2.82842708 : f32
    %42 = vector.broadcast %cst_12 : f32 to vector<17x17xf32>
    %43 = arith.mulf %41, %42 : vector<17x17xf32>
    %cst_13 = arith.constant dense<0xFF800000> : vector<17xf32>
    %44 = vector.multi_reduction <maximumf>, %43, %cst_13 [1] : vector<17x17xf32> to vector<17xf32>
    %45 = vector.shape_cast %44 : vector<17xf32> to vector<17x1xf32>
    %46 = vector.broadcast %45 : vector<17x1xf32> to vector<17x17xf32>
    %47 = arith.subf %43, %46 : vector<17x17xf32>
    %48 = math.exp %47 : vector<17x17xf32>
    %cst_14 = arith.constant dense<0.000000e+00> : vector<17xf32>
    %49 = vector.multi_reduction <add>, %48, %cst_14 [1] : vector<17x17xf32> to vector<17xf32>
    %50 = vector.shape_cast %49 : vector<17xf32> to vector<17x1xf32>
    %51 = tpu.reciprocal %50 {approx = true} : vector<17x1xf32> -> vector<17x1xf32>
    %52 = vector.broadcast %51 : vector<17x1xf32> to vector<17x17xf32>
    %53 = arith.mulf %48, %52 : vector<17x17xf32>
    %54 = arith.truncf %53 : vector<17x17xf32> to vector<17x17xbf16>
    %cst_15 = arith.constant dense<0.000000e+00> : vector<17x8xf32>
    %55 = tpu.matmul %54, %40, %cst_15 {dimension_numbers = #tpu.dot_dimension_numbers<[1], [0], [0], [1], [0, 0, 1, 1], [], []>} : vector<17x17xbf16>, vector<17x8xbf16>, vector<17x8xf32> -> vector<17x8xf32>
    %56 = vector.extract_strided_slice %1 {offsets = [0, 24], sizes = [17, 8], strides = [1, 1]} : vector<17x96xbf16> to vector<17x8xbf16>
    %57 = vector.extract_strided_slice %1 {offsets = [0, 56], sizes = [17, 8], strides = [1, 1]} : vector<17x96xbf16> to vector<17x8xbf16>
    %58 = vector.extract_strided_slice %1 {offsets = [0, 88], sizes = [17, 8], strides = [1, 1]} : vector<17x96xbf16> to vector<17x8xbf16>
    %cst_16 = arith.constant dense<0.000000e+00> : vector<17x17xf32>
    %59 = tpu.matmul %56, %57, %cst_16 {dimension_numbers = #tpu.dot_dimension_numbers<[1], [1], [0], [0], [0, 0, 1, 0], [], []>} : vector<17x8xbf16>, vector<17x8xbf16>, vector<17x17xf32> -> vector<17x17xf32>
    %cst_17 = arith.constant 2.82842708 : f32
    %60 = vector.broadcast %cst_17 : f32 to vector<17x17xf32>
    %61 = arith.mulf %59, %60 : vector<17x17xf32>
    %cst_18 = arith.constant dense<0xFF800000> : vector<17xf32>
    %62 = vector.multi_reduction <maximumf>, %61, %cst_18 [1] : vector<17x17xf32> to vector<17xf32>
    %63 = vector.shape_cast %62 : vector<17xf32> to vector<17x1xf32>
    %64 = vector.broadcast %63 : vector<17x1xf32> to vector<17x17xf32>
    %65 = arith.subf %61, %64 : vector<17x17xf32>
    %66 = math.exp %65 : vector<17x17xf32>
    %cst_19 = arith.constant dense<0.000000e+00> : vector<17xf32>
    %67 = vector.multi_reduction <add>, %66, %cst_19 [1] : vector<17x17xf32> to vector<17xf32>
    %68 = vector.shape_cast %67 : vector<17xf32> to vector<17x1xf32>
    %69 = tpu.reciprocal %68 {approx = true} : vector<17x1xf32> -> vector<17x1xf32>
    %70 = vector.broadcast %69 : vector<17x1xf32> to vector<17x17xf32>
    %71 = arith.mulf %66, %70 : vector<17x17xf32>
    %72 = arith.truncf %71 : vector<17x17xf32> to vector<17x17xbf16>
    %cst_20 = arith.constant dense<0.000000e+00> : vector<17x8xf32>
    %73 = tpu.matmul %72, %58, %cst_20 {dimension_numbers = #tpu.dot_dimension_numbers<[1], [0], [0], [1], [0, 0, 1, 1], [], []>} : vector<17x17xbf16>, vector<17x8xbf16>, vector<17x8xf32> -> vector<17x8xf32>
    %74 = tpu.concatenate %19, %37, %55, %73 in 1 : vector<17x8xf32>, vector<17x8xf32>, vector<17x8xf32>, vector<17x8xf32> -> vector<17x32xf32>
    %75 = arith.truncf %74 : vector<17x32xf32> to vector<17x32xbf16>
    %c0_21 = arith.constant 0 : index
    %c0_22 = arith.constant 0 : index
    %c0_23 = arith.constant 0 : index
    %76 = vector.load %arg2[%c0_21, %c0_22, %c0_23] : memref<1x17x32xbf16, #tpu.memory_space<vmem>>, vector<1x17x32xbf16>
    %77 = vector.shape_cast %76 : vector<1x17x32xbf16> to vector<17x32xbf16>
    %78 = vector.shape_cast %75 : vector<17x32xbf16> to vector<1x17x32xbf16>
    tpu.vector_store %arg2[%c0_21, %c0_22, %c0_23], %78 {strides = array<i32>} : memref<1x17x32xbf16, #tpu.memory_space<vmem>>, vector<1x17x32xbf16>,
    return
  }
  func.func @transform_0(%arg0: i32) -> (i32, i32, i32) {
    %c0_i32 = arith.constant 0 : i32
    %c0_i32_0 = arith.constant 0 : i32
    %c0_i32_1 = arith.constant 0 : i32
    return %arg0, %c0_i32, %c0_i32_0 : i32, i32, i32
  }
  func.func @transform_1(%arg0: i32) -> (i32, i32, i32) {
    %c0_i32 = arith.constant 0 : i32
    %c0_i32_0 = arith.constant 0 : i32
    %c0_i32_1 = arith.constant 0 : i32
    return %arg0, %c0_i32, %c0_i32_0 : i32, i32, i32
  }
}

module attributes {stable_mosaic.version = 11 : i64} {
  func.func @_linear_res_ln_kernel(%arg0: i32, %arg1: i32, %arg2: memref<34x32xbf16, #tpu.memory_space<vmem>>, %arg3: memref<32x32xbf16, #tpu.memory_space<vmem>>, %arg4: memref<34x32xbf16, #tpu.memory_space<vmem>>, %arg5: memref<1x32xf32, #tpu.memory_space<vmem>>, %arg6: memref<1x32xf32, #tpu.memory_space<vmem>>, %arg7: memref<34x32xbf16, #tpu.memory_space<vmem>>, %arg8: memref<34x32xf32, #tpu.memory_space<vmem>>) attributes {dimension_semantics = [#tpu.dimension_semantics<parallel>, #tpu.dimension_semantics<arbitrary>], iteration_bounds = array<i64: 1, 1>, scalar_prefetch = 0 : i64, scratch_operands = 1 : i64, tpu.core_type = #tpu.core_type<tc>, window_params = [{transform_indices = @transform_0, window_bounds = array<i64: 34, 32>}, {transform_indices = @transform_1, window_bounds = array<i64: 32, 32>}, {transform_indices = @transform_2, window_bounds = array<i64: 34, 32>}, {pipeline_mode = #tpu.pipeline_mode<synchronous>, transform_indices = @transform_3, window_bounds = array<i64: 1, 32>}, {pipeline_mode = #tpu.pipeline_mode<synchronous>, transform_indices = @transform_4, window_bounds = array<i64: 1, 32>}, {transform_indices = @transform_5, window_bounds = array<i64: 34, 32>}]} {
    %c0_i32 = arith.constant 0 : i32
    %0 = arith.cmpi eq, %arg1, %c0_i32 : i32
    %1 = arith.extui %0 : i1 to i32
    %c0_i32_0 = arith.constant 0 : i32
    %2 = arith.cmpi ne, %1, %c0_i32_0 : i32
    scf.if %2 {
      %cst_10 = arith.constant 0.000000e+00 : f32
      %12 = vector.broadcast %cst_10 : f32 to vector<34x32xf32>
      %c0_11 = arith.constant 0 : index
      %c0_12 = arith.constant 0 : index
      %13 = vector.load %arg8[%c0_11, %c0_12] : memref<34x32xf32, #tpu.memory_space<vmem>>, vector<34x32xf32>
      tpu.vector_store %arg8[%c0_11, %c0_12], %12 {strides = array<i32>} : memref<34x32xf32, #tpu.memory_space<vmem>>, vector<34x32xf32>,
    } else {
    }
    %c0 = arith.constant 0 : index
    %c0_1 = arith.constant 0 : index
    %3 = vector.load %arg8[%c0, %c0_1] : memref<34x32xf32, #tpu.memory_space<vmem>>, vector<34x32xf32>
    %c0_2 = arith.constant 0 : index
    %c0_3 = arith.constant 0 : index
    %4 = vector.load %arg2[%c0_2, %c0_3] : memref<34x32xbf16, #tpu.memory_space<vmem>>, vector<34x32xbf16>
    %c0_4 = arith.constant 0 : index
    %c0_5 = arith.constant 0 : index
    %5 = vector.load %arg3[%c0_4, %c0_5] : memref<32x32xbf16, #tpu.memory_space<vmem>>, vector<32x32xbf16>
    %cst = arith.constant dense<0.000000e+00> : vector<34x32xf32>
    %6 = tpu.matmul %4, %5, %cst {dimension_numbers = #tpu.dot_dimension_numbers<[1], [0], [0], [1], [0, 0, 1, 1], [], []>} : vector<34x32xbf16>, vector<32x32xbf16>, vector<34x32xf32> -> vector<34x32xf32>
    %7 = arith.addf %3, %6 : vector<34x32xf32>
    %c0_6 = arith.constant 0 : index
    %c0_7 = arith.constant 0 : index
    %8 = vector.load %arg8[%c0_6, %c0_7] : memref<34x32xf32, #tpu.memory_space<vmem>>, vector<34x32xf32>
    tpu.vector_store %arg8[%c0_6, %c0_7], %7 {strides = array<i32>} : memref<34x32xf32, #tpu.memory_space<vmem>>, vector<34x32xf32>,
    %c0_i32_8 = arith.constant 0 : i32
    %9 = arith.cmpi eq, %arg1, %c0_i32_8 : i32
    %10 = arith.extui %9 : i1 to i32
    %c0_i32_9 = arith.constant 0 : i32
    %11 = arith.cmpi ne, %10, %c0_i32_9 : i32
    scf.if %11 {
      %c0_10 = arith.constant 0 : index
      %c0_11 = arith.constant 0 : index
      %12 = vector.load %arg8[%c0_10, %c0_11] : memref<34x32xf32, #tpu.memory_space<vmem>>, vector<34x32xf32>
      %c0_12 = arith.constant 0 : index
      %c0_13 = arith.constant 0 : index
      %13 = vector.load %arg4[%c0_12, %c0_13] : memref<34x32xbf16, #tpu.memory_space<vmem>>, vector<34x32xbf16>
      %14 = arith.extf %13 : vector<34x32xbf16> to vector<34x32xf32>
      %15 = arith.addf %12, %14 : vector<34x32xf32>
      %cst_14 = arith.constant dense<0.000000e+00> : vector<34xf32>
      %16 = vector.multi_reduction <add>, %15, %cst_14 [1] : vector<34x32xf32> to vector<34xf32>
      %17 = vector.shape_cast %16 : vector<34xf32> to vector<34x1xf32>
      %cst_15 = arith.constant 3.200000e+01 : f32
      %18 = vector.broadcast %cst_15 : f32 to vector<34x1xf32>
      %19 = arith.divf %17, %18 : vector<34x1xf32>
      %20 = vector.broadcast %19 : vector<34x1xf32> to vector<34x32xf32>
      %21 = arith.subf %15, %20 : vector<34x32xf32>
      %22 = arith.mulf %21, %21 : vector<34x32xf32>
      %cst_16 = arith.constant dense<0.000000e+00> : vector<34xf32>
      %23 = vector.multi_reduction <add>, %22, %cst_16 [1] : vector<34x32xf32> to vector<34xf32>
      %24 = vector.shape_cast %23 : vector<34xf32> to vector<34x1xf32>
      %cst_17 = arith.constant 3.200000e+01 : f32
      %25 = vector.broadcast %cst_17 : f32 to vector<34x1xf32>
      %26 = arith.divf %24, %25 : vector<34x1xf32>
      %cst_18 = arith.constant 9.99999974E-6 : f32
      %27 = vector.broadcast %cst_18 : f32 to vector<34x1xf32>
      %28 = arith.addf %26, %27 : vector<34x1xf32>
      %29 = math.rsqrt %28 : vector<34x1xf32>
      %30 = vector.broadcast %29 : vector<34x1xf32> to vector<34x32xf32>
      %31 = arith.mulf %21, %30 : vector<34x32xf32>
      %c0_19 = arith.constant 0 : index
      %c0_20 = arith.constant 0 : index
      %32 = vector.load %arg5[%c0_19, %c0_20] : memref<1x32xf32, #tpu.memory_space<vmem>>, vector<1x32xf32>
      %33 = vector.broadcast %32 : vector<1x32xf32> to vector<34x32xf32>
      %34 = arith.mulf %31, %33 : vector<34x32xf32>
      %c0_21 = arith.constant 0 : index
      %c0_22 = arith.constant 0 : index
      %35 = vector.load %arg6[%c0_21, %c0_22] : memref<1x32xf32, #tpu.memory_space<vmem>>, vector<1x32xf32>
      %36 = vector.broadcast %35 : vector<1x32xf32> to vector<34x32xf32>
      %37 = arith.addf %34, %36 : vector<34x32xf32>
      %38 = arith.truncf %37 : vector<34x32xf32> to vector<34x32xbf16>
      %c0_23 = arith.constant 0 : index
      %c0_24 = arith.constant 0 : index
      %39 = vector.load %arg7[%c0_23, %c0_24] : memref<34x32xbf16, #tpu.memory_space<vmem>>, vector<34x32xbf16>
      tpu.vector_store %arg7[%c0_23, %c0_24], %38 {strides = array<i32>} : memref<34x32xbf16, #tpu.memory_space<vmem>>, vector<34x32xbf16>,
    } else {
    }
    return
  }
  func.func @transform_0(%arg0: i32, %arg1: i32) -> (i32, i32) {
    %c0_i32 = arith.constant 0 : i32
    return %arg0, %arg1 : i32, i32
  }
  func.func @transform_1(%arg0: i32, %arg1: i32) -> (i32, i32) {
    %c0_i32 = arith.constant 0 : i32
    %c0_i32_0 = arith.constant 0 : i32
    return %arg1, %c0_i32 : i32, i32
  }
  func.func @transform_2(%arg0: i32, %arg1: i32) -> (i32, i32) {
    %c0_i32 = arith.constant 0 : i32
    %c0_i32_0 = arith.constant 0 : i32
    return %arg0, %c0_i32 : i32, i32
  }
  func.func @transform_3(%arg0: i32, %arg1: i32) -> (i32, i32) {
    %c0_i32 = arith.constant 0 : i32
    %c0_i32_0 = arith.constant 0 : i32
    %c0_i32_1 = arith.constant 0 : i32
    return %c0_i32, %c0_i32_0 : i32, i32
  }
  func.func @transform_4(%arg0: i32, %arg1: i32) -> (i32, i32) {
    %c0_i32 = arith.constant 0 : i32
    %c0_i32_0 = arith.constant 0 : i32
    %c0_i32_1 = arith.constant 0 : i32
    return %c0_i32, %c0_i32_0 : i32, i32
  }
  func.func @transform_5(%arg0: i32, %arg1: i32) -> (i32, i32) {
    %c0_i32 = arith.constant 0 : i32
    %c0_i32_0 = arith.constant 0 : i32
    return %arg0, %c0_i32 : i32, i32
  }
}

module attributes {stable_mosaic.version = 11 : i64} {
  func.func @_linear_kernel(%arg0: i32, %arg1: i32, %arg2: i32, %arg3: memref<34x32xbf16, #tpu.memory_space<vmem>>, %arg4: memref<32x64xbf16, #tpu.memory_space<vmem>>, %arg5: memref<1x64xf32, #tpu.memory_space<vmem>>, %arg6: memref<34x64xbf16, #tpu.memory_space<vmem>>, %arg7: memref<34x64xf32, #tpu.memory_space<vmem>>) attributes {dimension_semantics = [#tpu.dimension_semantics<parallel>, #tpu.dimension_semantics<parallel>, #tpu.dimension_semantics<arbitrary>], iteration_bounds = array<i64: 1, 1, 1>, scalar_prefetch = 0 : i64, scratch_operands = 1 : i64, tpu.core_type = #tpu.core_type<tc>, window_params = [{transform_indices = @transform_0, window_bounds = array<i64: 34, 32>}, {transform_indices = @transform_1, window_bounds = array<i64: 32, 64>}, {transform_indices = @transform_2, window_bounds = array<i64: 1, 64>}, {transform_indices = @transform_3, window_bounds = array<i64: 34, 64>}]} {
    %c0_i32 = arith.constant 0 : i32
    %0 = arith.cmpi eq, %arg2, %c0_i32 : i32
    %1 = arith.extui %0 : i1 to i32
    %c0_i32_0 = arith.constant 0 : i32
    %2 = arith.cmpi ne, %1, %c0_i32_0 : i32
    scf.if %2 {
      %cst_10 = arith.constant 0.000000e+00 : f32
      %12 = vector.broadcast %cst_10 : f32 to vector<34x64xf32>
      %c0_11 = arith.constant 0 : index
      %c0_12 = arith.constant 0 : index
      %13 = vector.load %arg7[%c0_11, %c0_12] : memref<34x64xf32, #tpu.memory_space<vmem>>, vector<34x64xf32>
      tpu.vector_store %arg7[%c0_11, %c0_12], %12 {strides = array<i32>} : memref<34x64xf32, #tpu.memory_space<vmem>>, vector<34x64xf32>,
    } else {
    }
    %c0 = arith.constant 0 : index
    %c0_1 = arith.constant 0 : index
    %3 = vector.load %arg7[%c0, %c0_1] : memref<34x64xf32, #tpu.memory_space<vmem>>, vector<34x64xf32>
    %c0_2 = arith.constant 0 : index
    %c0_3 = arith.constant 0 : index
    %4 = vector.load %arg3[%c0_2, %c0_3] : memref<34x32xbf16, #tpu.memory_space<vmem>>, vector<34x32xbf16>
    %c0_4 = arith.constant 0 : index
    %c0_5 = arith.constant 0 : index
    %5 = vector.load %arg4[%c0_4, %c0_5] : memref<32x64xbf16, #tpu.memory_space<vmem>>, vector<32x64xbf16>
    %cst = arith.constant dense<0.000000e+00> : vector<34x64xf32>
    %6 = tpu.matmul %4, %5, %cst {dimension_numbers = #tpu.dot_dimension_numbers<[1], [0], [0], [1], [0, 0, 1, 1], [], []>} : vector<34x32xbf16>, vector<32x64xbf16>, vector<34x64xf32> -> vector<34x64xf32>
    %7 = arith.addf %3, %6 : vector<34x64xf32>
    %c0_6 = arith.constant 0 : index
    %c0_7 = arith.constant 0 : index
    %8 = vector.load %arg7[%c0_6, %c0_7] : memref<34x64xf32, #tpu.memory_space<vmem>>, vector<34x64xf32>
    tpu.vector_store %arg7[%c0_6, %c0_7], %7 {strides = array<i32>} : memref<34x64xf32, #tpu.memory_space<vmem>>, vector<34x64xf32>,
    %c0_i32_8 = arith.constant 0 : i32
    %9 = arith.cmpi eq, %arg2, %c0_i32_8 : i32
    %10 = arith.extui %9 : i1 to i32
    %c0_i32_9 = arith.constant 0 : i32
    %11 = arith.cmpi ne, %10, %c0_i32_9 : i32
    scf.if %11 {
      %c0_10 = arith.constant 0 : index
      %c0_11 = arith.constant 0 : index
      %12 = vector.load %arg7[%c0_10, %c0_11] : memref<34x64xf32, #tpu.memory_space<vmem>>, vector<34x64xf32>
      %c0_12 = arith.constant 0 : index
      %c0_13 = arith.constant 0 : index
      %13 = vector.load %arg5[%c0_12, %c0_13] : memref<1x64xf32, #tpu.memory_space<vmem>>, vector<1x64xf32>
      %14 = vector.broadcast %13 : vector<1x64xf32> to vector<34x64xf32>
      %15 = arith.addf %12, %14 : vector<34x64xf32>
      %cst_14 = arith.constant 5.000000e-01 : f32
      %16 = vector.broadcast %cst_14 : f32 to vector<34x64xf32>
      %17 = arith.mulf %16, %15 : vector<34x64xf32>
      %cst_15 = arith.constant 0.707106769 : f32
      %18 = vector.broadcast %cst_15 : f32 to vector<34x64xf32>
      %19 = arith.mulf %15, %18 : vector<34x64xf32>
      %20 = math.absf %19 : vector<34x64xf32>
      %cst_16 = arith.constant 0.327591091 : f32
      %21 = vector.broadcast %cst_16 : f32 to vector<34x64xf32>
      %22 = arith.mulf %21, %20 : vector<34x64xf32>
      %cst_17 = arith.constant 1.000000e+00 : f32
      %23 = vector.broadcast %cst_17 : f32 to vector<34x64xf32>
      %24 = arith.addf %23, %22 : vector<34x64xf32>
      %cst_18 = arith.constant 1.000000e+00 : f32
      %25 = vector.broadcast %cst_18 : f32 to vector<34x64xf32>
      %26 = arith.divf %25, %24 : vector<34x64xf32>
      %cst_19 = arith.constant 1.06140542 : f32
      %27 = vector.broadcast %cst_19 : f32 to vector<34x64xf32>
      %28 = arith.mulf %27, %26 : vector<34x64xf32>
      %cst_20 = arith.constant -1.45315206 : f32
      %29 = vector.broadcast %cst_20 : f32 to vector<34x64xf32>
      %30 = arith.addf %28, %29 : vector<34x64xf32>
      %31 = arith.mulf %30, %26 : vector<34x64xf32>
      %cst_21 = arith.constant 1.42141378 : f32
      %32 = vector.broadcast %cst_21 : f32 to vector<34x64xf32>
      %33 = arith.addf %31, %32 : vector<34x64xf32>
      %34 = arith.mulf %33, %26 : vector<34x64xf32>
      %cst_22 = arith.constant -0.284496725 : f32
      %35 = vector.broadcast %cst_22 : f32 to vector<34x64xf32>
      %36 = arith.addf %34, %35 : vector<34x64xf32>
      %37 = arith.mulf %36, %26 : vector<34x64xf32>
      %cst_23 = arith.constant 0.254829586 : f32
      %38 = vector.broadcast %cst_23 : f32 to vector<34x64xf32>
      %39 = arith.addf %37, %38 : vector<34x64xf32>
      %40 = arith.mulf %39, %26 : vector<34x64xf32>
      %cst_24 = arith.constant 0.000000e+00 : f32
      %41 = vector.broadcast %cst_24 : f32 to vector<34x64xf32>
      %42 = arith.subf %41, %20 : vector<34x64xf32>
      %43 = arith.mulf %42, %20 : vector<34x64xf32>
      %44 = math.exp %43 : vector<34x64xf32>
      %45 = arith.mulf %40, %44 : vector<34x64xf32>
      %cst_25 = arith.constant 1.000000e+00 : f32
      %46 = vector.broadcast %cst_25 : f32 to vector<34x64xf32>
      %47 = arith.subf %46, %45 : vector<34x64xf32>
      %cst_26 = arith.constant 0.000000e+00 : f32
      %48 = vector.broadcast %cst_26 : f32 to vector<34x64xf32>
      %49 = arith.cmpf oge, %19, %48 : vector<34x64xf32>
      %cst_27 = arith.constant 0.000000e+00 : f32
      %50 = vector.broadcast %cst_27 : f32 to vector<34x64xf32>
      %51 = arith.subf %50, %47 : vector<34x64xf32>
      %52 = arith.select %49, %47, %51 : vector<34x64xi1>, vector<34x64xf32>
      %cst_28 = arith.constant 1.000000e+00 : f32
      %53 = vector.broadcast %cst_28 : f32 to vector<34x64xf32>
      %54 = arith.addf %53, %52 : vector<34x64xf32>
      %55 = arith.mulf %17, %54 : vector<34x64xf32>
      %56 = arith.truncf %55 : vector<34x64xf32> to vector<34x64xbf16>
      %c0_29 = arith.constant 0 : index
      %c0_30 = arith.constant 0 : index
      %57 = vector.load %arg6[%c0_29, %c0_30] : memref<34x64xbf16, #tpu.memory_space<vmem>>, vector<34x64xbf16>
      tpu.vector_store %arg6[%c0_29, %c0_30], %56 {strides = array<i32>} : memref<34x64xbf16, #tpu.memory_space<vmem>>, vector<34x64xbf16>,
    } else {
    }
    return
  }
  func.func @transform_0(%arg0: i32, %arg1: i32, %arg2: i32) -> (i32, i32) {
    %c0_i32 = arith.constant 0 : i32
    return %arg0, %arg2 : i32, i32
  }
  func.func @transform_1(%arg0: i32, %arg1: i32, %arg2: i32) -> (i32, i32) {
    %c0_i32 = arith.constant 0 : i32
    return %arg2, %arg1 : i32, i32
  }
  func.func @transform_2(%arg0: i32, %arg1: i32, %arg2: i32) -> (i32, i32) {
    %c0_i32 = arith.constant 0 : i32
    %c0_i32_0 = arith.constant 0 : i32
    return %c0_i32, %arg1 : i32, i32
  }
  func.func @transform_3(%arg0: i32, %arg1: i32, %arg2: i32) -> (i32, i32) {
    %c0_i32 = arith.constant 0 : i32
    return %arg0, %arg1 : i32, i32
  }
}

module attributes {stable_mosaic.version = 11 : i64} {
  func.func @_linear_res_ln_kernel(%arg0: i32, %arg1: i32, %arg2: memref<34x64xbf16, #tpu.memory_space<vmem>>, %arg3: memref<64x32xbf16, #tpu.memory_space<vmem>>, %arg4: memref<1x32xf32, #tpu.memory_space<vmem>>, %arg5: memref<34x32xbf16, #tpu.memory_space<vmem>>, %arg6: memref<1x32xf32, #tpu.memory_space<vmem>>, %arg7: memref<1x32xf32, #tpu.memory_space<vmem>>, %arg8: memref<34x32xbf16, #tpu.memory_space<vmem>>, %arg9: memref<34x32xf32, #tpu.memory_space<vmem>>) attributes {dimension_semantics = [#tpu.dimension_semantics<parallel>, #tpu.dimension_semantics<arbitrary>], iteration_bounds = array<i64: 1, 1>, scalar_prefetch = 0 : i64, scratch_operands = 1 : i64, tpu.core_type = #tpu.core_type<tc>, window_params = [{transform_indices = @transform_0, window_bounds = array<i64: 34, 64>}, {transform_indices = @transform_1, window_bounds = array<i64: 64, 32>}, {pipeline_mode = #tpu.pipeline_mode<synchronous>, transform_indices = @transform_2, window_bounds = array<i64: 1, 32>}, {transform_indices = @transform_3, window_bounds = array<i64: 34, 32>}, {pipeline_mode = #tpu.pipeline_mode<synchronous>, transform_indices = @transform_4, window_bounds = array<i64: 1, 32>}, {pipeline_mode = #tpu.pipeline_mode<synchronous>, transform_indices = @transform_5, window_bounds = array<i64: 1, 32>}, {transform_indices = @transform_6, window_bounds = array<i64: 34, 32>}]} {
    %c0_i32 = arith.constant 0 : i32
    %0 = arith.cmpi eq, %arg1, %c0_i32 : i32
    %1 = arith.extui %0 : i1 to i32
    %c0_i32_0 = arith.constant 0 : i32
    %2 = arith.cmpi ne, %1, %c0_i32_0 : i32
    scf.if %2 {
      %cst_10 = arith.constant 0.000000e+00 : f32
      %12 = vector.broadcast %cst_10 : f32 to vector<34x32xf32>
      %c0_11 = arith.constant 0 : index
      %c0_12 = arith.constant 0 : index
      %13 = vector.load %arg9[%c0_11, %c0_12] : memref<34x32xf32, #tpu.memory_space<vmem>>, vector<34x32xf32>
      tpu.vector_store %arg9[%c0_11, %c0_12], %12 {strides = array<i32>} : memref<34x32xf32, #tpu.memory_space<vmem>>, vector<34x32xf32>,
    } else {
    }
    %c0 = arith.constant 0 : index
    %c0_1 = arith.constant 0 : index
    %3 = vector.load %arg9[%c0, %c0_1] : memref<34x32xf32, #tpu.memory_space<vmem>>, vector<34x32xf32>
    %c0_2 = arith.constant 0 : index
    %c0_3 = arith.constant 0 : index
    %4 = vector.load %arg2[%c0_2, %c0_3] : memref<34x64xbf16, #tpu.memory_space<vmem>>, vector<34x64xbf16>
    %c0_4 = arith.constant 0 : index
    %c0_5 = arith.constant 0 : index
    %5 = vector.load %arg3[%c0_4, %c0_5] : memref<64x32xbf16, #tpu.memory_space<vmem>>, vector<64x32xbf16>
    %cst = arith.constant dense<0.000000e+00> : vector<34x32xf32>
    %6 = tpu.matmul %4, %5, %cst {dimension_numbers = #tpu.dot_dimension_numbers<[1], [0], [0], [1], [0, 0, 1, 1], [], []>} : vector<34x64xbf16>, vector<64x32xbf16>, vector<34x32xf32> -> vector<34x32xf32>
    %7 = arith.addf %3, %6 : vector<34x32xf32>
    %c0_6 = arith.constant 0 : index
    %c0_7 = arith.constant 0 : index
    %8 = vector.load %arg9[%c0_6, %c0_7] : memref<34x32xf32, #tpu.memory_space<vmem>>, vector<34x32xf32>
    tpu.vector_store %arg9[%c0_6, %c0_7], %7 {strides = array<i32>} : memref<34x32xf32, #tpu.memory_space<vmem>>, vector<34x32xf32>,
    %c0_i32_8 = arith.constant 0 : i32
    %9 = arith.cmpi eq, %arg1, %c0_i32_8 : i32
    %10 = arith.extui %9 : i1 to i32
    %c0_i32_9 = arith.constant 0 : i32
    %11 = arith.cmpi ne, %10, %c0_i32_9 : i32
    scf.if %11 {
      %c0_10 = arith.constant 0 : index
      %c0_11 = arith.constant 0 : index
      %12 = vector.load %arg9[%c0_10, %c0_11] : memref<34x32xf32, #tpu.memory_space<vmem>>, vector<34x32xf32>
      %c0_12 = arith.constant 0 : index
      %c0_13 = arith.constant 0 : index
      %13 = vector.load %arg4[%c0_12, %c0_13] : memref<1x32xf32, #tpu.memory_space<vmem>>, vector<1x32xf32>
      %14 = vector.broadcast %13 : vector<1x32xf32> to vector<34x32xf32>
      %15 = arith.addf %12, %14 : vector<34x32xf32>
      %c0_14 = arith.constant 0 : index
      %c0_15 = arith.constant 0 : index
      %16 = vector.load %arg5[%c0_14, %c0_15] : memref<34x32xbf16, #tpu.memory_space<vmem>>, vector<34x32xbf16>
      %17 = arith.extf %16 : vector<34x32xbf16> to vector<34x32xf32>
      %18 = arith.addf %15, %17 : vector<34x32xf32>
      %cst_16 = arith.constant dense<0.000000e+00> : vector<34xf32>
      %19 = vector.multi_reduction <add>, %18, %cst_16 [1] : vector<34x32xf32> to vector<34xf32>
      %20 = vector.shape_cast %19 : vector<34xf32> to vector<34x1xf32>
      %cst_17 = arith.constant 3.200000e+01 : f32
      %21 = vector.broadcast %cst_17 : f32 to vector<34x1xf32>
      %22 = arith.divf %20, %21 : vector<34x1xf32>
      %23 = vector.broadcast %22 : vector<34x1xf32> to vector<34x32xf32>
      %24 = arith.subf %18, %23 : vector<34x32xf32>
      %25 = arith.mulf %24, %24 : vector<34x32xf32>
      %cst_18 = arith.constant dense<0.000000e+00> : vector<34xf32>
      %26 = vector.multi_reduction <add>, %25, %cst_18 [1] : vector<34x32xf32> to vector<34xf32>
      %27 = vector.shape_cast %26 : vector<34xf32> to vector<34x1xf32>
      %cst_19 = arith.constant 3.200000e+01 : f32
      %28 = vector.broadcast %cst_19 : f32 to vector<34x1xf32>
      %29 = arith.divf %27, %28 : vector<34x1xf32>
      %cst_20 = arith.constant 9.99999974E-6 : f32
      %30 = vector.broadcast %cst_20 : f32 to vector<34x1xf32>
      %31 = arith.addf %29, %30 : vector<34x1xf32>
      %32 = math.rsqrt %31 : vector<34x1xf32>
      %33 = vector.broadcast %32 : vector<34x1xf32> to vector<34x32xf32>
      %34 = arith.mulf %24, %33 : vector<34x32xf32>
      %c0_21 = arith.constant 0 : index
      %c0_22 = arith.constant 0 : index
      %35 = vector.load %arg6[%c0_21, %c0_22] : memref<1x32xf32, #tpu.memory_space<vmem>>, vector<1x32xf32>
      %36 = vector.broadcast %35 : vector<1x32xf32> to vector<34x32xf32>
      %37 = arith.mulf %34, %36 : vector<34x32xf32>
      %c0_23 = arith.constant 0 : index
      %c0_24 = arith.constant 0 : index
      %38 = vector.load %arg7[%c0_23, %c0_24] : memref<1x32xf32, #tpu.memory_space<vmem>>, vector<1x32xf32>
      %39 = vector.broadcast %38 : vector<1x32xf32> to vector<34x32xf32>
      %40 = arith.addf %37, %39 : vector<34x32xf32>
      %41 = arith.truncf %40 : vector<34x32xf32> to vector<34x32xbf16>
      %c0_25 = arith.constant 0 : index
      %c0_26 = arith.constant 0 : index
      %42 = vector.load %arg8[%c0_25, %c0_26] : memref<34x32xbf16, #tpu.memory_space<vmem>>, vector<34x32xbf16>
      tpu.vector_store %arg8[%c0_25, %c0_26], %41 {strides = array<i32>} : memref<34x32xbf16, #tpu.memory_space<vmem>>, vector<34x32xbf16>,
    } else {
    }
    return
  }
  func.func @transform_0(%arg0: i32, %arg1: i32) -> (i32, i32) {
    %c0_i32 = arith.constant 0 : i32
    return %arg0, %arg1 : i32, i32
  }
  func.func @transform_1(%arg0: i32, %arg1: i32) -> (i32, i32) {
    %c0_i32 = arith.constant 0 : i32
    %c0_i32_0 = arith.constant 0 : i32
    return %arg1, %c0_i32 : i32, i32
  }
  func.func @transform_2(%arg0: i32, %arg1: i32) -> (i32, i32) {
    %c0_i32 = arith.constant 0 : i32
    %c0_i32_0 = arith.constant 0 : i32
    %c0_i32_1 = arith.constant 0 : i32
    return %c0_i32, %c0_i32_0 : i32, i32
  }
  func.func @transform_3(%arg0: i32, %arg1: i32) -> (i32, i32) {
    %c0_i32 = arith.constant 0 : i32
    %c0_i32_0 = arith.constant 0 : i32
    return %arg0, %c0_i32 : i32, i32
  }
  func.func @transform_4(%arg0: i32, %arg1: i32) -> (i32, i32) {
    %c0_i32 = arith.constant 0 : i32
    %c0_i32_0 = arith.constant 0 : i32
    %c0_i32_1 = arith.constant 0 : i32
    return %c0_i32, %c0_i32_0 : i32, i32
  }
  func.func @transform_5(%arg0: i32, %arg1: i32) -> (i32, i32) {
    %c0_i32 = arith.constant 0 : i32
    %c0_i32_0 = arith.constant 0 : i32
    %c0_i32_1 = arith.constant 0 : i32
    return %c0_i32, %c0_i32_0 : i32, i32
  }
  func.func @transform_6(%arg0: i32, %arg1: i32) -> (i32, i32) {
    %c0_i32 = arith.constant 0 : i32
    %c0_i32_0 = arith.constant 0 : i32
    return %arg0, %c0_i32 : i32, i32
  }
}

module attributes {stable_mosaic.version = 11 : i64} {
  func.func @_linear_kernel(%arg0: i32, %arg1: i32, %arg2: i32, %arg3: memref<2x32xbf16, #tpu.memory_space<vmem>>, %arg4: memref<32x4xbf16, #tpu.memory_space<vmem>>, %arg5: memref<1x4xf32, #tpu.memory_space<vmem>>, %arg6: memref<2x4xf32, #tpu.memory_space<vmem>>, %arg7: memref<2x4xf32, #tpu.memory_space<vmem>>) attributes {dimension_semantics = [#tpu.dimension_semantics<parallel>, #tpu.dimension_semantics<parallel>, #tpu.dimension_semantics<arbitrary>], iteration_bounds = array<i64: 1, 1, 1>, scalar_prefetch = 0 : i64, scratch_operands = 1 : i64, tpu.core_type = #tpu.core_type<tc>, window_params = [{transform_indices = @transform_0, window_bounds = array<i64: 2, 32>}, {transform_indices = @transform_1, window_bounds = array<i64: 32, 4>}, {transform_indices = @transform_2, window_bounds = array<i64: 1, 4>}, {transform_indices = @transform_3, window_bounds = array<i64: 2, 4>}]} {
    %c0_i32 = arith.constant 0 : i32
    %0 = arith.cmpi eq, %arg2, %c0_i32 : i32
    %1 = arith.extui %0 : i1 to i32
    %c0_i32_0 = arith.constant 0 : i32
    %2 = arith.cmpi ne, %1, %c0_i32_0 : i32
    scf.if %2 {
      %cst_10 = arith.constant 0.000000e+00 : f32
      %12 = vector.broadcast %cst_10 : f32 to vector<2x4xf32>
      %c0_11 = arith.constant 0 : index
      %c0_12 = arith.constant 0 : index
      %13 = vector.load %arg7[%c0_11, %c0_12] : memref<2x4xf32, #tpu.memory_space<vmem>>, vector<2x4xf32>
      tpu.vector_store %arg7[%c0_11, %c0_12], %12 {strides = array<i32>} : memref<2x4xf32, #tpu.memory_space<vmem>>, vector<2x4xf32>,
    } else {
    }
    %c0 = arith.constant 0 : index
    %c0_1 = arith.constant 0 : index
    %3 = vector.load %arg7[%c0, %c0_1] : memref<2x4xf32, #tpu.memory_space<vmem>>, vector<2x4xf32>
    %c0_2 = arith.constant 0 : index
    %c0_3 = arith.constant 0 : index
    %4 = vector.load %arg3[%c0_2, %c0_3] : memref<2x32xbf16, #tpu.memory_space<vmem>>, vector<2x32xbf16>
    %c0_4 = arith.constant 0 : index
    %c0_5 = arith.constant 0 : index
    %5 = vector.load %arg4[%c0_4, %c0_5] : memref<32x4xbf16, #tpu.memory_space<vmem>>, vector<32x4xbf16>
    %cst = arith.constant dense<0.000000e+00> : vector<2x4xf32>
    %6 = tpu.matmul %4, %5, %cst {dimension_numbers = #tpu.dot_dimension_numbers<[1], [0], [0], [1], [0, 0, 1, 1], [], []>} : vector<2x32xbf16>, vector<32x4xbf16>, vector<2x4xf32> -> vector<2x4xf32>
    %7 = arith.addf %3, %6 : vector<2x4xf32>
    %c0_6 = arith.constant 0 : index
    %c0_7 = arith.constant 0 : index
    %8 = vector.load %arg7[%c0_6, %c0_7] : memref<2x4xf32, #tpu.memory_space<vmem>>, vector<2x4xf32>
    tpu.vector_store %arg7[%c0_6, %c0_7], %7 {strides = array<i32>} : memref<2x4xf32, #tpu.memory_space<vmem>>, vector<2x4xf32>,
    %c0_i32_8 = arith.constant 0 : i32
    %9 = arith.cmpi eq, %arg2, %c0_i32_8 : i32
    %10 = arith.extui %9 : i1 to i32
    %c0_i32_9 = arith.constant 0 : i32
    %11 = arith.cmpi ne, %10, %c0_i32_9 : i32
    scf.if %11 {
      %c0_10 = arith.constant 0 : index
      %c0_11 = arith.constant 0 : index
      %12 = vector.load %arg7[%c0_10, %c0_11] : memref<2x4xf32, #tpu.memory_space<vmem>>, vector<2x4xf32>
      %c0_12 = arith.constant 0 : index
      %c0_13 = arith.constant 0 : index
      %13 = vector.load %arg5[%c0_12, %c0_13] : memref<1x4xf32, #tpu.memory_space<vmem>>, vector<1x4xf32>
      %14 = vector.broadcast %13 : vector<1x4xf32> to vector<2x4xf32>
      %15 = arith.addf %12, %14 : vector<2x4xf32>
      %c0_14 = arith.constant 0 : index
      %c0_15 = arith.constant 0 : index
      %16 = vector.load %arg6[%c0_14, %c0_15] : memref<2x4xf32, #tpu.memory_space<vmem>>, vector<2x4xf32>
      tpu.vector_store %arg6[%c0_14, %c0_15], %15 {strides = array<i32>} : memref<2x4xf32, #tpu.memory_space<vmem>>, vector<2x4xf32>,
    } else {
    }
    return
  }
  func.func @transform_0(%arg0: i32, %arg1: i32, %arg2: i32) -> (i32, i32) {
    %c0_i32 = arith.constant 0 : i32
    return %arg0, %arg2 : i32, i32
  }
  func.func @transform_1(%arg0: i32, %arg1: i32, %arg2: i32) -> (i32, i32) {
    %c0_i32 = arith.constant 0 : i32
    return %arg2, %arg1 : i32, i32
  }
  func.func @transform_2(%arg0: i32, %arg1: i32, %arg2: i32) -> (i32, i32) {
    %c0_i32 = arith.constant 0 : i32
    %c0_i32_0 = arith.constant 0 : i32
    return %c0_i32, %arg1 : i32, i32
  }
  func.func @transform_3(%arg0: i32, %arg1: i32, %arg2: i32) -> (i32, i32) {
    %c0_i32 = arith.constant 0 : i32
    return %arg0, %arg1 : i32, i32
  }
}

</mosaic_0001>

<bundles_post_ra>
// kernel: _lambda_.13
= control target key start
LH: loop header
LB: loop body
LE: loop exit
PB: predicated region body
PF: predicated region fallthrough
CT: control target
= control target key end

     0   :  { %vm16_vm0 = vcmask 785408   ;;  %v230_v0 = vmov 0.0   ;;  %vm231_vm1 = vmmov 0   ;;  %vm62_vm2 = vcmask 261120   ;;  %s290_s1 = inlined_call_operand.vmem [shape: bf16[32,96], index: 1, kind: input, shape index: {}]   ;;  %s291_s0 = inlined_call_operand.vmem [shape: bf16[34,32], index: 0, kind: input, shape index: {}]   ;;  %s292_s2 = inlined_call_operand.vmem [shape: bf16[34,96], index: 2, kind: output, shape index: {}]  }
   0x1   :  { %219 = vmatprep.subr.bf16.mxu1 %v230_v0  ;;  %v225_v1 = vld [vmem:[%s290_s1] sm:$0xff]   ;;  %203 = vmatprep.subr.bf16.mxu0 %v230_v0  ;;  %19 = vst.msk [vmem:[#allocation2 + $0x10] sm:$0xff] %vm16_vm0, %v230_v0  ;;  %17 = vst.msk [vmem:[#allocation2] sm:$0xff] %vm16_vm0, %v230_v0  ;;  %v226_v2 = vld [vmem:[%s290_s1 + $0x8] sm:$0xff]   ;;  %vm21_vm3 = vcmask 779264   ;;  %vm169_vm4 = vcmask 781312  }
   0x2   :  { %18 = vst.msk [vmem:[#allocation2 + $0x8] sm:$0xff] %vm16_vm0, %v230_v0  ;;  %20 = vst.msk [vmem:[#allocation2 + $0x18] sm:$0xff] %vm16_vm0, %v230_v0  ;;  %211 = vmatprep.mubr.msk.bf16.mxu1 %vm231_vm1, %v230_v0  ;;  %207 = vmatprep.mubr.msk.bf16.mxu0 %vm231_vm1, %v230_v0  ;;  %v227_v3 = vld [vmem:[%s291_s0 + $0x8] sm:$0xff]   ;;  %v228_v4 = vld [vmem:[%s291_s0] sm:$0xff]   ;;  %vm174_vm5 = vcmask 778240  }
   0x3   :  { %221 = vmatpush3.bf16.msra.mxu1 %v225_v1  ;;  %204 = vmatpush3.bf16.msra.mxu0 %v225_v1  ;;  %v229_v5 = vld [vmem:[%s291_s0 + $0x10] ss:$0 sps:$4 sm:$0x11]   ;;  %22 = vst.msk [vmem:[#allocation2 + $0x20] sm:$0x3] %vm21_vm3, %v230_v0 }
   0x4   :  { %220 = vmatprep.subr.bf16.mxu1 %v230_v0  ;;  %205 = vmatprep.subr.bf16.mxu0 %v230_v0 }
   0x7   :  { %222 = vmatpush3.bf16.msra.mxu1 %v226_v2  ;;  %206 = vmatpush3.bf16.msra.mxu0 %v226_v2 }
   0x8   :  { %v25_v6 = vld [vmem:[#allocation2 + $0x10] sm:$0xff]  ;;  %v23_v7 = vld [vmem:[#allocation2] sm:$0xff] }
   0x9   :  { %v26_v9 = vld [vmem:[#allocation2 + $0x18] sm:$0xff]  ;;  %v24_v11 = vld [vmem:[#allocation2 + $0x8] sm:$0xff] }
   0xa   :  { %212 = vmatmul.mubr.msk.bf16.vlgmr.msra.gmra.mrb[0].mxu1 %vm62_vm2, %v227_v3  ;;  %208 = vmatmul.mubr.msk.bf16.vlgmr.msra.gmra.mrb[0].mxu0 %vm62_vm2, %v228_v4  ;;  %v27_v22 = vld [vmem:[#allocation2 + $0x20] sm:$0x3] }
   0xb   :  { %215 = vmatprep.mubr.msk.bf16.mxu1 %vm231_vm1, %v230_v0 }
  0x12   :  { %216 = vmatmul.mubr.msk.bf16.gmra.mrb[4].mxu1 %vm62_vm2, %v229_v5 }
  0xdd   :  { %v114_v8 = vpop.f32.mrb[0].mxu1  ;;  %v106_v10 = vpop.f32.mrb[0].mxu0 }
  0xde   :  { %v130_v12 = vadd.f32 %v114_v8, %v25_v6  ;;  %v213_v13 = vpop.f32.mrb[1].mxu1  ;;  %v128_v14 = vadd.f32 %v106_v10, %v23_v7  ;;  %v209_v15 = vpop.f32.mrb[1].mxu0 }
  0xdf   :  { %v117_v16 = vpop.f32.mrb[2].mxu1  ;;  %v109_v17 = vpop.f32.mrb[2].mxu0 }
  0xe0   :  { %136 = vst.msk [vmem:[#allocation2 + $0x10] sm:$0xff] %vm16_vm0, %v130_v12  ;;  %v131_v18 = vadd.f32 %v117_v16, %v26_v9  ;;  %134 = vst.msk [vmem:[#allocation2] sm:$0xff] %vm16_vm0, %v128_v14  ;;  %v214_v19 = vpop.f32.mrb[3].mxu1  ;;  %v129_v20 = vadd.f32 %v109_v17, %v24_v11  ;;  %v210_v21 = vpop.f32.mrb[3].mxu0 }
  0xe2   :  { %137 = vst.msk [vmem:[#allocation2 + $0x18] sm:$0xff] %vm16_vm0, %v131_v18  ;;  %135 = vst.msk [vmem:[#allocation2 + $0x8] sm:$0xff] %vm16_vm0, %v129_v20 }
  0xe5   :  { %v122_v23 = vpop.f32.mrb[4].mxu1 }
  0xe6   :  { %v132_v24 = vadd.f32 %v122_v23, %v27_v22  ;;  %v217_v25 = vpop.f32.mrb[5].mxu1 }
  0xe7   :  { %v145_v26 = vld [vmem:[#allocation2 + $0x10] sm:$0xff]  ;;  %v143_v27 = vld [vmem:[#allocation2] sm:$0xff]  ;;  %v125_v28 = vpop.f32.mrb[6].mxu1 }
  0xe8   :  { %v195_v29 = vpack.c.bf16 %v145_v26, %v145_v26  ;;  %v193_v30 = vpack.c.bf16 %v143_v27, %v143_v27  ;;  %139 = vst.msk [vmem:[#allocation2 + $0x20] sm:$0x3] %vm21_vm3, %v132_v24  ;;  %v218_v31 = vpop.f32.mrb[7].mxu1 }
  0xe9   :  { %v146_v32 = vld [vmem:[#allocation2 + $0x18] sm:$0xff]  ;;  %v144_v33 = vld [vmem:[#allocation2 + $0x8] sm:$0xff] }
  0xea   :  { %172 = vst.msk [vmem:[%s292_s2 + $0x8] sm:$0xf] %vm169_vm4, %v195_v29  ;;  %v196_v34 = vpack.c.bf16 %v146_v32, %v146_v32  ;;  %170 = vst.msk [vmem:[%s292_s2] sm:$0xf] %vm169_vm4, %v193_v30  ;;  %v194_v35 = vpack.c.bf16 %v144_v33, %v144_v33 }
  0xec   :  { %173 = vst.msk [vmem:[%s292_s2 + $0xc] sm:$0xf] %vm169_vm4, %v196_v34  ;;  %171 = vst.msk [vmem:[%s292_s2 + $0x4] sm:$0xf] %vm169_vm4, %v194_v35 }
  0xef   :  { %v147_v36 = vld [vmem:[#allocation2 + $0x20] sm:$0x3] }
  0xf0   :  { %v197_v37 = vpack.c.bf16 %v147_v36, %v147_v36 }
  0xf2   :  { %175 = vst.msk [vmem:[%s292_s2 + $0x10] sm:$0x1] %vm174_vm5, %v197_v37 }

// kernel: _lambda_.12
= control target key start
LH: loop header
LB: loop body
LE: loop exit
PB: predicated region body
PF: predicated region fallthrough
CT: control target
= control target key end

     0   :  { %vm19_vm0 = vcmask 261120   ;;  %v199_v1 = vmov 0.0   ;;  %vm74_vm1 = vcmask 523264   ;;  %s265_s1 = inlined_call_operand.vmem [shape: bf16[64,32], index: 1, kind: input, shape index: {}]   ;;  %s266_s0 = inlined_call_operand.vmem [shape: bf16[32,64], index: 0, kind: input, shape index: {}]   ;;  %s267_s2 = inlined_call_operand.vmem [shape: f32[1,32], index: 2, kind: input, shape index: {}]   ;;  %s268_s3 = inlined_call_operand.vmem [shape: f32[32,32], index: 3, kind: output, shape index: {}]  }
   0x1   :  { %v193_v0 = vld [vmem:[%s265_s1] sm:$0xff]   ;;  %22 = vst.msk [vmem:[#allocation2 + $0x10] sm:$0xff] %vm19_vm0, %v199_v1  ;;  %20 = vst.msk [vmem:[#allocation2] sm:$0xff] %vm19_vm0, %v199_v1  ;;  %v194_v2 = vld [vmem:[%s265_s1 + $0x8] sm:$0xff]  }
   0x2   :  { %21 = vst.msk [vmem:[#allocation2 + $0x8] sm:$0xff] %vm19_vm0, %v199_v1  ;;  %23 = vst.msk [vmem:[#allocation2 + $0x18] sm:$0xff] %vm19_vm0, %v199_v1  ;;  %180 = vmatprep.subr.bf16.mxu0 %v193_v0  ;;  %v195_v3 = vld [vmem:[%s265_s1 + $0x10] sm:$0xff]   ;;  %v197_v4 = vld [vmem:[%s266_s0] sm:$0xff]  }
   0x3   :  { %181 = vmatpush3.bf16.msra.mxu0 %v193_v0  ;;  %188 = vmatprep.mubr.msk.bf16.mxu0 %vm74_vm1, %v197_v4  ;;  %v196_v5 = vld [vmem:[%s265_s1 + $0x18] sm:$0xff]   ;;  %v198_v6 = vld [vmem:[%s266_s0 + $0x8] sm:$0xff]   ;;  %v173_v19 = vld [vmem:[%s267_s2] ss:$0 sm:$0xff] }
   0x4   :  { %182 = vmatprep.subr.bf16.mxu0 %v194_v2 }
   0x7   :  { %183 = vmatpush3.bf16.msra.mxu0 %v194_v2 }
   0x8   :  { %184 = vmatprep.subr.bf16.mxu0 %v195_v3  ;;  %v26_v7 = vld [vmem:[#allocation2 + $0x10] sm:$0xff]  ;;  %v24_v8 = vld [vmem:[#allocation2] sm:$0xff] }
   0x9   :  { %v27_v10 = vld [vmem:[#allocation2 + $0x18] sm:$0xff]  ;;  %v25_v13 = vld [vmem:[#allocation2 + $0x8] sm:$0xff] }
   0xb   :  { %185 = vmatpush3.bf16.msra.mxu0 %v195_v3 }
   0xc   :  { %186 = vmatprep.subr.bf16.mxu0 %v196_v5 }
   0xf   :  { %187 = vmatpush3.bf16.msra.mxu0 %v196_v5 }
  0x12   :  { %189 = vmatmul.mubr.msk.bf16.vlgmr.msra.gmra.mrb[0].mxu0 %vm74_vm1, %v198_v6 }
  0xe5   :  { %v190_v9 = vpop.f32.mrb[0].mxu0 }
  0xe6   :  { %v132_v11 = vadd.f32 %v190_v9, %v26_v7  ;;  %v115_v12 = vpop.f32.mrb[1].mxu0 }
  0xe7   :  { %v130_v14 = vadd.f32 %v115_v12, %v24_v8  ;;  %v191_v15 = vpop.f32.mrb[2].mxu0 }
  0xe8   :  { %137 = vst.msk [vmem:[#allocation2 + $0x10] sm:$0xff] %vm19_vm0, %v132_v11  ;;  %v133_v16 = vadd.f32 %v191_v15, %v27_v10  ;;  %v118_v17 = vpop.f32.mrb[3].mxu0 }
  0xe9   :  { %135 = vst.msk [vmem:[#allocation2] sm:$0xff] %vm19_vm0, %v130_v14  ;;  %v131_v18 = vadd.f32 %v118_v17, %v25_v13 }
  0xea   :  { %138 = vst.msk [vmem:[#allocation2 + $0x18] sm:$0xff] %vm19_vm0, %v133_v16 }
  0xeb   :  { %136 = vst.msk [vmem:[#allocation2 + $0x8] sm:$0xff] %vm19_vm0, %v131_v18 }
  0xef   :  { %v144_v20 = vld [vmem:[#allocation2 + $0x10] sm:$0xff] }
  0xf0   :  { %v155_v21 = vadd.f32 %v173_v19, %v144_v20  ;;  %v142_v22 = vld [vmem:[#allocation2] sm:$0xff] }
  0xf1   :  { %v153_v23 = vadd.f32 %v173_v19, %v142_v22  ;;  %v145_v24 = vld [vmem:[#allocation2 + $0x18] sm:$0xff] }
  0xf2   :  { %159 = vst.msk [vmem:[%s268_s3 + $0x10] sm:$0xff] %vm19_vm0, %v155_v21  ;;  %v156_v25 = vadd.f32 %v173_v19, %v145_v24  ;;  %v143_v26 = vld [vmem:[#allocation2 + $0x8] sm:$0xff] }
  0xf3   :  { %157 = vst.msk [vmem:[%s268_s3] sm:$0xff] %vm19_vm0, %v153_v23  ;;  %v154_v27 = vadd.f32 %v173_v19, %v143_v26 }
  0xf4   :  { %160 = vst.msk [vmem:[%s268_s3 + $0x18] sm:$0xff] %vm19_vm0, %v156_v25 }
  0xf5   :  { %158 = vst.msk [vmem:[%s268_s3 + $0x8] sm:$0xff] %vm19_vm0, %v154_v27 }

// kernel: _lambda_.15
= control target key start
LH: loop header
LB: loop body
LE: loop exit
PB: predicated region body
PF: predicated region fallthrough
CT: control target
= control target key end

     0   :  { %vm25_vm0 = vcmask 261120   ;;  %v364_v0 = vmov 0.0   ;;  %vm365_vm1 = vmmov 0   ;;  %vm30_vm2 = vcmask 254976   ;;  %s468_s1 = inlined_call_operand.vmem [shape: bf16[32,32], index: 1, kind: input, shape index: {}]   ;;  %s469_s0 = inlined_call_operand.vmem [shape: bf16[34,32], index: 0, kind: input, shape index: {}]   ;;  %s470_s2 = inlined_call_operand.vmem [shape: bf16[34,32], index: 2, kind: input, shape index: {}]   ;;  %s471_s3 = inlined_call_operand.vmem [shape: f32[1,32], index: 3, kind: input, shape index: {}]   ;;  %s472_s4 = inlined_call_operand.vmem [shape: f32[1,32], index: 4, kind: input, shape index: {}]   ;;  %s473_s5 = inlined_call_operand.vmem [shape: bf16[34,32], index: 5, kind: output, shape index: {}]  }
   0x1   :  { %327 = vmatprep.subr.bf16.mxu0 %v364_v0  ;;  %343 = vmatprep.subr.bf16.mxu1 %v364_v0  ;;  %v349_v1 = vld [vmem:[%s468_s1] sm:$0xff]   ;;  %26 = vst.msk [vmem:[#allocation2] sm:$0xff] %vm25_vm0, %v364_v0  ;;  %27 = vst.msk [vmem:[#allocation2 + $0x8] sm:$0xff] %vm25_vm0, %v364_v0  ;;  %v350_v2 = vld [vmem:[%s468_s1 + $0x8] sm:$0xff]   ;;  %vm282_vm3 = vcmask 257024   ;;  %vm287_vm4 = vcmask 253952  }
   0x2   :  { %28 = vst.msk [vmem:[#allocation2 + $0x10] sm:$0xff] %vm25_vm0, %v364_v0  ;;  %29 = vst.msk [vmem:[#allocation2 + $0x18] sm:$0xff] %vm25_vm0, %v364_v0  ;;  %331 = vmatprep.mubr.msk.bf16.mxu0 %vm365_vm1, %v364_v0  ;;  %335 = vmatprep.mubr.msk.bf16.mxu1 %vm365_vm1, %v364_v0  ;;  %v351_v3 = vld [vmem:[%s469_s0] sm:$0xff]   ;;  %v352_v4 = vld [vmem:[%s469_s0 + $0x8] sm:$0xff]  }
   0x3   :  { %328 = vmatpush3.bf16.msra.mxu0 %v349_v1  ;;  %345 = vmatpush3.bf16.msra.mxu1 %v349_v1  ;;  %v353_v5 = vld [vmem:[%s469_s0 + $0x10] ss:$0 sps:$4 sm:$0x11]   ;;  %31 = vst.msk [vmem:[#allocation2 + $0x20] sm:$0x3] %vm30_vm2, %v364_v0  ;;  %v321_v22 = vld [vmem:[%s470_s2 + $0x8] sm:$0xff]  }
   0x4   :  { %329 = vmatprep.subr.bf16.mxu0 %v364_v0  ;;  %344 = vmatprep.subr.bf16.mxu1 %v364_v0  ;;  %v314_v23 = vld [vmem:[%s470_s2] sm:$0xff]   ;;  %v319_v25 = vunpack.c.l.bf16 %v321_v22  ;;  %v320_v30 = vunpack.c.h.bf16 %v321_v22  ;;  %v160_v40 = vld [vmem:[%s470_s2 + $0x10] sm:$0x1] }
   0x5   :  { %v315_v26 = vunpack.c.l.bf16 %v314_v23  ;;  %v316_v31 = vunpack.c.h.bf16 %v314_v23  ;;  %v165_v45 = vunpack.c.l.bf16 %v160_v40 }
   0x7   :  { %330 = vmatpush3.bf16.msra.mxu0 %v350_v2  ;;  %346 = vmatpush3.bf16.msra.mxu1 %v350_v2 }
   0x8   :  { %v32_v6 = vld [vmem:[#allocation2] sm:$0xff]  ;;  %v33_v10 = vld [vmem:[#allocation2 + $0x8] sm:$0xff] }
   0x9   :  { %v34_v7 = vld [vmem:[#allocation2 + $0x10] sm:$0xff]  ;;  %v35_v11 = vld [vmem:[#allocation2 + $0x18] sm:$0xff] }
   0xa   :  { %332 = vmatmul.mubr.msk.bf16.vlgmr.msra.gmra.mrb[0].mxu0 %vm25_vm0, %v351_v3  ;;  %336 = vmatmul.mubr.msk.bf16.vlgmr.msra.gmra.mrb[0].mxu1 %vm25_vm0, %v352_v4  ;;  %v36_v24 = vld [vmem:[#allocation2 + $0x20] sm:$0x3] }
   0xb   :  { %339 = vmatprep.mubr.msk.bf16.mxu1 %vm365_vm1, %v364_v0 }
  0x12   :  { %340 = vmatmul.mubr.msk.bf16.gmra.mrb[4].mxu1 %vm25_vm0, %v353_v5 }
  0xdd   :  { %v115_v8 = vpop.f32.mrb[0].mxu0  ;;  %v123_v9 = vpop.f32.mrb[0].mxu1 }
  0xde   :  { %v137_v12 = vadd.f32 %v115_v8, %v32_v6  ;;  %v139_v13 = vadd.f32 %v123_v9, %v34_v7  ;;  %v333_v14 = vpop.f32.mrb[1].mxu0  ;;  %v337_v15 = vpop.f32.mrb[1].mxu1 }
  0xdf   :  { %v118_v16 = vpop.f32.mrb[2].mxu0  ;;  %v126_v17 = vpop.f32.mrb[2].mxu1 }
  0xe0   :  { %142 = vst.msk [vmem:[#allocation2] sm:$0xff] %vm25_vm0, %v137_v12  ;;  %144 = vst.msk [vmem:[#allocation2 + $0x10] sm:$0xff] %vm25_vm0, %v139_v13  ;;  %v138_v18 = vadd.f32 %v118_v16, %v33_v10  ;;  %v140_v19 = vadd.f32 %v126_v17, %v35_v11  ;;  %v334_v20 = vpop.f32.mrb[3].mxu0  ;;  %v338_v21 = vpop.f32.mrb[3].mxu1 }
  0xe2   :  { %143 = vst.msk [vmem:[#allocation2 + $0x8] sm:$0xff] %vm25_vm0, %v138_v18  ;;  %145 = vst.msk [vmem:[#allocation2 + $0x18] sm:$0xff] %vm25_vm0, %v140_v19 }
  0xe5   :  { %v131_v27 = vpop.f32.mrb[4].mxu1 }
  0xe6   :  { %v141_v28 = vadd.f32 %v131_v27, %v36_v24  ;;  %v341_v29 = vpop.f32.mrb[5].mxu1 }
  0xe7   :  { %v134_v32 = vpop.f32.mrb[6].mxu1  ;;  %v153_v33 = vld [vmem:[#allocation2 + $0x10] sm:$0xff]  ;;  %v151_v34 = vld [vmem:[#allocation2] sm:$0xff] }
  0xe8   :  { %147 = vst.msk [vmem:[#allocation2 + $0x20] sm:$0x3] %vm30_vm2, %v141_v28  ;;  %v342_v35 = vpop.f32.mrb[7].mxu1  ;;  %v168_v36 = vadd.f32 %v319_v25, %v153_v33  ;;  %v166_v37 = vadd.f32 %v315_v26, %v151_v34  ;;  %v301_v28 = vld [vmem:[%s471_s3] ss:$0 sm:$0xff] }
  0xe9   :  { %v154_v38 = vld [vmem:[#allocation2 + $0x18] sm:$0xff]  ;;  %v152_v39 = vld [vmem:[#allocation2 + $0x8] sm:$0xff] }
  0xea   :  { %v177_v41 = vsel %vm25_vm0, %v168_v36, 0.0  ;;  %v171_v42 = vsel %vm25_vm0, %v166_v37, 0.0  ;;  %v169_v43 = vadd.f32 %v320_v30, %v154_v38  ;;  %v167_v44 = vadd.f32 %v316_v31, %v152_v39  ;;  %v302_v30 = vld [vmem:[%s472_s4] ss:$0 sm:$0xff] }
  0xeb   :  { %178 = vadd.xlane.f32.xlu1 %v177_v41  ;;  %172 = vadd.xlane.f32.xlu0 %v171_v42 }
  0xec   :  { %v180_v46 = vsel %vm25_vm0, %v169_v43, 0.0  ;;  %v174_v47 = vsel %vm25_vm0, %v167_v44, 0.0 }
  0xef   :  { %181 = vadd.xlane.f32.xlu1 %v180_v46  ;;  %175 = vadd.xlane.f32.xlu0 %v174_v47  ;;  %v155_v48 = vld [vmem:[#allocation2 + $0x20] sm:$0x3] }
  0xf0   :  { %v170_v49 = vadd.f32 %v165_v45, %v155_v48 }
  0xf2   :  { %v183_v50 = vsel %vm30_vm2, %v170_v49, 0.0 }
  0xf3   :  { %184 = vadd.xlane.f32.xlu0 %v183_v50 }
 0x178   :  { %v179_v51 = vpop.xlane.xlu1 %178  ;;  %v173_v52 = vpop.xlane.xlu0 %172 }
 0x179   :  { %v189_v53 = vmul.f32 0.03125, %v179_v51  ;;  %v187_v54 = vmul.f32 0.03125, %v173_v52 }
 0x17b   :  { %v194_v55 = vsub.f32 %v168_v36, %v189_v53  ;;  %v192_v56 = vsub.f32 %v166_v37, %v187_v54 }
 0x17c   :  { %v182_v57 = vpop.xlane.xlu1 %181  ;;  %v176_v58 = vpop.xlane.xlu0 %175 }
 0x17d   :  { %v190_v59 = vmul.f32 0.03125, %v182_v57  ;;  %v188_v60 = vmul.f32 0.03125, %v176_v58  ;;  %v197_v61 = vmul.f32 %v192_v56, %v192_v56  ;;  %v199_v1 = vmul.f32 %v194_v55, %v194_v55 }
 0x17f   :  { %v195_v62 = vsub.f32 %v169_v43, %v190_v59  ;;  %v193_v63 = vsub.f32 %v167_v44, %v188_v60  ;;  %v202_v0 = vsel %vm25_vm0, %v197_v61, 0.0  ;;  %v208_v6 = vsel %vm25_vm0, %v199_v1, 0.0 }
 0x180   :  { %203 = vadd.xlane.f32.xlu1 %v202_v0  ;;  %v185_v2 = vpop.xlane.xlu0 %184 }
 0x181   :  { %v191_v3 = vmul.f32 0.03125, %v185_v2  ;;  %v198_v4 = vmul.f32 %v193_v63, %v193_v63  ;;  %v200_v8 = vmul.f32 %v195_v62, %v195_v62 }
 0x183   :  { %v196_v5 = vsub.f32 %v170_v49, %v191_v3  ;;  %v205_v7 = vsel %vm25_vm0, %v198_v4, 0.0  ;;  %v211_v10 = vsel %vm25_vm0, %v200_v8, 0.0 }
 0x184   :  { %209 = vadd.xlane.f32.xlu1 %v208_v6  ;;  %206 = vadd.xlane.f32.xlu0 %v205_v7 }
 0x185   :  { %v201_v9 = vmul.f32 %v196_v5, %v196_v5 }
 0x187   :  { %v214_v11 = vsel %vm30_vm2, %v201_v9, 0.0 }
 0x188   :  { %212 = vadd.xlane.f32.xlu0 %v211_v10  ;;  %215 = vadd.xlane.f32.xlu1 %v214_v11 }
 0x20d   :  { %v204_v12 = vpop.xlane.xlu1 %203 }
 0x20e   :  { %v217_v13 = vmul.f32 0.03125, %v204_v12 }
 0x210   :  { %v222_v14 = vadd.f32 1e-05, %v217_v13 }
 0x211   :  { %v210_v15 = vpop.xlane.xlu1 %209  ;;  %v207_v16 = vpop.xlane.xlu0 %206 }
 0x212   :  { %354 = vrsqrt.f32 %v222_v14  ;;  %v219_v17 = vmul.f32 0.03125, %v210_v15  ;;  %v218_v18 = vmul.f32 0.03125, %v207_v16 }
 0x214   :  { %v224_v19 = vadd.f32 1e-05, %v219_v17  ;;  %v223_v20 = vadd.f32 1e-05, %v218_v18 }
 0x215   :  { %v216_v21 = vpop.xlane.xlu1 %215  ;;  %v213_v22 = vpop.xlane.xlu0 %212 }
 0x216   :  { %356 = vrsqrt.f32 %v224_v19  ;;  %v221_v23 = vmul.f32 0.03125, %v216_v21  ;;  %v220_v24 = vmul.f32 0.03125, %v213_v22 }
 0x217   :  { %358 = vrsqrt.f32 %v223_v20 }
 0x218   :  { %v226_v25 = vadd.f32 1e-05, %v221_v23  ;;  %v225_v26 = vadd.f32 1e-05, %v220_v24 }
 0x21a   :  { %360 = vrsqrt.f32 %v226_v25 }
 0x21b   :  { %362 = vrsqrt.f32 %v225_v26 }
 0x21c   :  { %v355_v27 = vpop.eup %354 }
 0x21d   :  { %v232_v29 = vmul.f32 %v355_v27, %v192_v56 }
 0x21f   :  { %v244_v31 = vmul.f32 %v301_v28, %v232_v29 }
 0x220   :  { %v357_v32 = vpop.eup %356 }
 0x221   :  { %v359_v33 = vpop.eup %358  ;;  %v256_v34 = vadd.f32 %v302_v30, %v244_v31  ;;  %v234_v35 = vmul.f32 %v357_v32, %v194_v55 }
 0x222   :  { %v233_v36 = vmul.f32 %v359_v33, %v193_v63 }
 0x223   :  { %v308_v37 = vpack.c.bf16 %v256_v34, %v256_v34  ;;  %v246_v38 = vmul.f32 %v301_v28, %v234_v35 }
 0x224   :  { %v361_v39 = vpop.eup %360  ;;  %v245_v40 = vmul.f32 %v301_v28, %v233_v36 }
 0x225   :  { %v363_v41 = vpop.eup %362  ;;  %283 = vst.msk [vmem:[%s473_s5] sm:$0xf] %vm282_vm3, %v308_v37  ;;  %v258_v42 = vadd.f32 %v302_v30, %v246_v38  ;;  %v236_v43 = vmul.f32 %v361_v39, %v196_v5 }
 0x226   :  { %v257_v44 = vadd.f32 %v302_v30, %v245_v40  ;;  %v235_v45 = vmul.f32 %v363_v41, %v195_v62 }
 0x227   :  { %v310_v46 = vpack.c.bf16 %v258_v42, %v258_v42  ;;  %v248_v47 = vmul.f32 %v301_v28, %v236_v43 }
 0x228   :  { %v309_v48 = vpack.c.bf16 %v257_v44, %v257_v44  ;;  %v247_v49 = vmul.f32 %v301_v28, %v235_v45 }
 0x229   :  { %285 = vst.msk [vmem:[%s473_s5 + $0x8] sm:$0xf] %vm282_vm3, %v310_v46  ;;  %v260_v50 = vadd.f32 %v302_v30, %v248_v47 }
 0x22a   :  { %284 = vst.msk [vmem:[%s473_s5 + $0x4] sm:$0xf] %vm282_vm3, %v309_v48  ;;  %v259_v51 = vadd.f32 %v302_v30, %v247_v49 }
 0x22b   :  { %v312_v52 = vpack.c.bf16 %v260_v50, %v260_v50 }
 0x22c   :  { %v311_v53 = vpack.c.bf16 %v259_v51, %v259_v51 }
 0x22d   :  { %288 = vst.msk [vmem:[%s473_s5 + $0x10] sm:$0x1] %vm287_vm4, %v312_v52 }
 0x22e   :  { %286 = vst.msk [vmem:[%s473_s5 + $0xc] sm:$0xf] %vm282_vm3, %v311_v53 }

// kernel: _lambda_.14
= control target key start
LH: loop header
LB: loop body
LE: loop exit
PB: predicated region body
PF: predicated region fallthrough
CT: control target
= control target key end

     0   :  { %s1186_s6 = smov 0   ;;  %s1334_s0 = inlined_call_operand.vmem [shape: bf16[2,17,96], index: 0, kind: input, shape index: {}]   ;;  %s1335_s1 = inlined_call_operand.vmem [shape: bf16[2,17,32], index: 1, kind: output, shape index: {}]  }
   0x1 LB: > { %s927_s7 = sadd.s32 4294967295, %s1159_s6   ;;  %p931_p0 = scmp.ge.s32.totalorder %s1159_s6, 1  ;;  %s1159_s6 = sphi %s1186_s6, %s11_s6  }
   0x2   : > { %p87_p1 = scmp.lt.s32.totalorder %s1159_s6, 3 }
   0x4   : > { %p88_p2 = pnand %p931_p0, %p87_p1 }
   0x5   : > { %p107_p3 = scmp.lt.s32.totalorder (!%p88_p2), %s927_s7, 1  ;;  %vm133_vm0 = vcmask (!%p88_p2), 64512   ;;  %s1161_s12 = smov (!%p88_p2), 96   ;;  %vm204_vm1 = vcmask (!%p88_p2), 131072   ;;  %vm197_vm2 = vcmask (!%p88_p2), 138240   ;;  %vm245_vm3 = vcmask (!%p88_p2), 1040384  }
   0x6   : > { %91 = sbr.rel (%p88_p2) target bundleno = 2693 (0xa85), region = 24  ;;  %s1162_s13 = smov (!%p88_p2), 64   ;;  %v1165_v35 = vmov (!%p88_p2), 0   ;;  %vm842_vm4 = vcmask (!%p88_p2), 130048   ;;  %vm846_vm5 = vcmask (!%p88_p2), 195584   ;;  %vm866_vm6 = vcmask (!%p88_p2), 253952  }
   0x7   : > { %s1163_s14 = smov (!%p88_p2), 88   ;;  %s1164_s15 = smov (!%p88_p2), 120   ;;  %v1228_v36 = vsel (!%p88_p2), %vm245_vm3, 65535, %v1165_v35  ;;  %vm867_vm7 = vsmask.f32 (!%p88_p2), 256  ;;  %vm863_vm8 = vcmask (!%p88_p2), 257024  }
   0x8   : > { %s1166_s16 = smov (!%p88_p2), 56   ;;  %s1167_s17 = smov (!%p88_p2), 80   ;;  %vm868_vm9 = vmand (!%p88_p2), %vm866_vm6, %vm867_vm7 }
   0x9   : > { %s1168_s18 = smov (!%p88_p2), 112   ;;  %s1169_s19 = smov (!%p88_p2), 48  }
   0xa   : > { %s1170_s20 = smov (!%p88_p2), 72   ;;  %s1171_s21 = smov (!%p88_p2), 104  }
   0xb   : > { %s1172_s22 = smov (!%p88_p2), 40   ;;  %s1173_s23 = smov (!%p88_p2), 8  }
   0xc   : > { %s1174_s24 = smov (!%p88_p2), 16   ;;  %s1175_s25 = smov (!%p88_p2), 24  }
   0xd   : > { %s1337_s7 = smov (!%p107_p3, %s927_s7), 1 }
   0xe   : > { %s1064_s8 = smul.u32 12, %s1337_s7 }
  0x10   : > { %s111_s11 = scalar_lea.vmem %s1334_s0, %s1064_s8  ;;  %s116_s28 = scalar_lea.vmem %s1335_s1, %s1064_s8 }
  0x11   : > { %v1202_v0 = vld [vmem:[%s111_s11] sm:$0xff]   ;;  %v1205_v1 = vld [vmem:[%s111_s11 + $0x8] ss:$0 sps:$4 sm:$0x11]  }
  0x12   : > { %129 = vrot.lane.b32.xlu0 %v1202_v0, %s1161_s12  ;;  %996 = vmatprep.mubr.msk.bf16.mxu0 %vm133_vm0, %v1202_v0 }
  0x16   : > { %131 = vrot.lane.b32.xlu0 %v1205_v1, %s1161_s12 }
  0x84   : > { %v130_v2 = vpop.permute.xlu0 %129 }
  0x85   : > { %1056 = vmatprep.subr.msk.bf16.mxu0 %vm133_vm0, %v130_v2  ;;  %v141_v3 = vsel %vm133_vm0, %v130_v2, 0 }
  0x86   : > { %993 = vmatpush3.bf16.xpose.msra.mxu0 %v141_v3 }
  0x88   : > { %v132_v4 = vpop.permute.xlu0 %131 }
  0x89   : > { %1057 = vmatprep.subr.msk.bf16.mxu0 %vm133_vm0, %v132_v4  ;;  %v144_v5 = vsel %vm133_vm0, %v132_v4, 0 }
  0x8e   : > { %995 = vmatpush3.bf16.xpose.msra.mxu0 %v144_v5 }
  0x95   : > { %997 = vmatmul.mubr.msk.bf16.vlgmr.msra.gmra.mrb[0].mxu0 %vm133_vm0, %v1205_v1 }
 0x168   : > { %v998_v6 = vpop.f32.mrb[0].mxu0 }
 0x169   : > { %v196_v7 = vmul.f32 2.828427, %v998_v6  ;;  %v180_v8 = vpop.f32.mrb[1].mxu0 }
 0x16a   : > { %v194_v9 = vmul.f32 2.828427, %v180_v8  ;;  %v999_v10 = vpop.f32.mrb[2].mxu0 }
 0x16b   : > { %v183_v11 = vpop.f32.mrb[3].mxu0  ;;  %v205_v12 = vsel %vm204_vm1, %v196_v7, -inf }
 0x16c   : > { %v195_v13 = vmul.f32 2.828427, %v183_v11  ;;  %206 = vmax.xlane.f32.xlu0 %v205_v12  ;;  %v198_v14 = vsel %vm197_vm2, %v194_v9, -inf }
 0x16d   : > { %199 = vmax.xlane.f32.xlu1 %v198_v14 }
 0x16e   : > { %v201_v15 = vsel %vm197_vm2, %v195_v13, -inf }
 0x171   : > { %202 = vmax.xlane.f32.xlu1 %v201_v15 }
 0x182   : > { %234 = vrot.lane.b32.xlu1 %v1202_v0, %s1162_s13  ;;  %303 = vrot.lane.b32.xlu0 %v1202_v0, %s1163_s14 }
 0x1f9   : > { %v207_v16 = vpop.xlane.xlu0 %206 }
 0x1fa   : > { %v210_v17 = vsub.f32 %v196_v7, %v207_v16  ;;  %v200_v18 = vpop.xlane.xlu1 %199 }
 0x1fb   : > { %v208_v19 = vsub.f32 %v194_v9, %v200_v18 }
 0x1fc   : > { %v215_v20 = vmul.f32 1.442695, %v210_v17 }
 0x1fd   : > { %v211_v21 = vmul.f32 1.442695, %v208_v19  ;;  %v304_v39 = vpop.permute.xlu0 %303 }
 0x1fe   : > { %1105 = vpow2.f32 %v215_v20  ;;  %v203_v22 = vpop.xlane.xlu1 %202  ;;  %v314_v48 = vsel %vm133_vm0, %v304_v39, 0 }
 0x1ff   : > { %v209_v23 = vsub.f32 %v195_v13, %v203_v22  ;;  %1107 = vpow2.f32 %v211_v21 }
 0x201   : > { %v213_v24 = vmul.f32 1.442695, %v209_v23 }
 0x202   : > { %v235_v25 = vpop.permute.xlu1 %234 }
 0x203   : > { %1000 = vmatprep.subr.bf16.mxu1 %v235_v25  ;;  %1109 = vpow2.f32 %v213_v24 }
 0x204   : > { %1001 = vmatpush3.bf16.msra.mxu1 %v235_v25 }
 0x208   : > { %v1106_v26 = vpop.eup %1105 }
 0x209   : > { %v223_v27 = vsel %vm204_vm1, %v1106_v26, 0.0  ;;  %v1108_v28 = vpop.eup %1107 }
 0x20a   : > { %224 = vadd.xlane.f32.xlu1 %v223_v27  ;;  %v217_v29 = vsel %vm197_vm2, %v1108_v28, 0.0 }
 0x20d   : > { %v1110_v30 = vpop.eup %1109 }
 0x20e   : > { %218 = vadd.xlane.f32.xlu1 %v217_v29  ;;  %v220_v31 = vsel %vm197_vm2, %v1110_v30, 0.0 }
 0x212   : > { %221 = vadd.xlane.f32.xlu1 %v220_v31 }
 0x223   : > { %236 = vrot.lane.b32.xlu1 %v1205_v1, %s1162_s13 }
 0x227   : > { %305 = vrot.lane.b32.xlu1 %v1205_v1, %s1163_s14 }
 0x22b   : > { %299 = vrot.lane.b32.xlu1 %v1202_v0, %s1164_s15 }
 0x22f   : > { %301 = vrot.lane.b32.xlu1 %v1205_v1, %s1164_s15 }
 0x297   : > { %v225_v32 = vpop.xlane.xlu1 %224 }
 0x298   : > { %1111 = vrcp.f32 %v225_v32 }
 0x29b   : > { %v219_v33 = vpop.xlane.xlu1 %218 }
 0x29c   : > { %1113 = vrcp.f32 %v219_v33 }
 0x29f   : > { %v222_v34 = vpop.xlane.xlu1 %221 }
 0x2a0   : > { %1115 = vrcp.f32 %v222_v34 }
 0x2a2   : > { %v1112_v40 = vpop.eup %1111 }
 0x2a3   : > { %v237_v37 = vpop.permute.xlu1 %236  ;;  %v231_v44 = vmul.f32 %v1112_v40, %v1106_v26 }
 0x2a4   : > { %v249_v38 = vand.u32 %v1228_v36, %v237_v37 }
 0x2a5   : > { %v233_v49 = vpack.c.bf16 %v231_v44, %v231_v44 }
 0x2a6   : > { %1002 = vmatprep.subr.bf16.mxu1 %v249_v38  ;;  %v1114_v41 = vpop.eup %1113 }
 0x2a7   : > { %1003 = vmatpush3.bf16.msra.mxu1 %v249_v38  ;;  %v306_v42 = vpop.permute.xlu1 %305  ;;  %v229_v45 = vmul.f32 %v1114_v41, %v1108_v28 }
 0x2a8   : > { %1058 = vmatprep.subr.msk.bf16.mxu1 %vm133_vm0, %v304_v39  ;;  %v317_v51 = vsel %vm133_vm0, %v306_v42, 0 }
 0x2aa   : > { %v1116_v43 = vpop.eup %1115 }
 0x2ab   : > { %v230_v46 = vmul.f32 %v1116_v43, %v1110_v30  ;;  %v300_v50 = vpop.permute.xlu1 %299 }
 0x2ad   : > { %v232_v47 = vpack.c.bf16 %v230_v46, %v229_v45 }
 0x2af   : > { %1004 = vmatprep.mubr.msk.bf16.mxu1 %vm197_vm2, %v232_v47  ;;  %v302_v52 = vpop.permute.xlu1 %301 }
 0x2b0   : > { %1005 = vmatmul.mubr.msk.bf16.vlgmr.msra.gmra.mrb[0].mxu1 %vm197_vm2, %v233_v49 }
 0x2b1   : > { %1009 = vmatpush3.bf16.xpose.msra.mxu1 %v314_v48  ;;  %1012 = vmatprep.mubr.msk.bf16.mxu1 %vm133_vm0, %v300_v50 }
 0x2b2   : > { %1059 = vmatprep.subr.msk.bf16.mxu1 %vm133_vm0, %v306_v42 }
 0x2b9   : > { %1011 = vmatpush3.bf16.xpose.msra.mxu1 %v317_v51 }
 0x2c0   : > { %1013 = vmatmul.mubr.msk.bf16.vlgmr.msra.gmra.mrb[4].mxu1 %vm133_vm0, %v302_v52 }
 0x383   : > { %v1239_v53 = vpop.f32.mrb[0].mxu1 }
 0x384   : > { %v1241_v54 = vpop.f32.mrb[1].mxu1 }
 0x385   : > { %v1007_v55 = vpop.f32.mrb[2].mxu1 }
 0x386   : > { %v1243_v56 = vpop.f32.mrb[3].mxu1 }
 0x393   : > { %v1014_v57 = vpop.f32.mrb[4].mxu1 }
 0x394   : > { %v353_v58 = vpop.f32.mrb[5].mxu1  ;;  %v369_v62 = vmul.f32 2.828427, %v1014_v57 }
 0x395   : > { %v367_v59 = vmul.f32 2.828427, %v353_v58  ;;  %v1015_v60 = vpop.f32.mrb[6].mxu1 }
 0x396   : > { %v356_v61 = vpop.f32.mrb[7].mxu1  ;;  %v376_v4 = vsel %vm204_vm1, %v369_v62, -inf }
 0x397   : > { %v368_v63 = vmul.f32 2.828427, %v356_v61  ;;  %v370_v2 = vsel %vm197_vm2, %v367_v59, -inf }
 0x398   : > { %371 = vmax.xlane.f32.xlu1 %v370_v2 }
 0x399   : > { %v373_v3 = vsel %vm197_vm2, %v368_v63, -inf }
 0x39a   : > { %374 = vmax.xlane.f32.xlu0 %v373_v3 }
 0x39c   : > { %377 = vmax.xlane.f32.xlu1 %v376_v4 }
 0x3ad   : > { %405 = vrot.lane.b32.xlu1 %v1202_v0, %s1166_s16 }
 0x425   : > { %v372_v5 = vpop.xlane.xlu1 %371 }
 0x426   : > { %v379_v7 = vsub.f32 %v367_v59, %v372_v5 }
 0x427   : > { %v375_v6 = vpop.xlane.xlu0 %374 }
 0x428   : > { %v380_v8 = vsub.f32 %v368_v63, %v375_v6  ;;  %v382_v12 = vmul.f32 1.442695, %v379_v7 }
 0x429   : > { %v378_v9 = vpop.xlane.xlu1 %377 }
 0x42a   : > { %v384_v10 = vmul.f32 1.442695, %v380_v8  ;;  %v381_v11 = vsub.f32 %v369_v62, %v378_v9 }
 0x42c   : > { %1117 = vpow2.f32 %v384_v10  ;;  %v386_v13 = vmul.f32 1.442695, %v381_v11 }
 0x42d   : > { %v406_v14 = vpop.permute.xlu1 %405 }
 0x42e   : > { %1119 = vpow2.f32 %v386_v13  ;;  %1016 = vmatprep.subr.bf16.mxu0 %v406_v14 }
 0x42f   : > { %1017 = vmatpush3.bf16.msra.mxu0 %v406_v14  ;;  %1121 = vpow2.f32 %v382_v12 }
 0x436   : > { %v1118_v15 = vpop.eup %1117 }
 0x437   : > { %v391_v16 = vsel %vm197_vm2, %v1118_v15, 0.0 }
 0x438   : > { %v1120_v17 = vpop.eup %1119  ;;  %392 = vadd.xlane.f32.xlu1 %v391_v16 }
 0x439   : > { %v394_v18 = vsel %vm204_vm1, %v1120_v17, 0.0  ;;  %v1122_v19 = vpop.eup %1121 }
 0x43a   : > { %395 = vadd.xlane.f32.xlu0 %v394_v18  ;;  %v388_v20 = vsel %vm197_vm2, %v1122_v19, 0.0 }
 0x43e   : > { %389 = vadd.xlane.f32.xlu0 %v388_v20 }
 0x449   : > { %471 = vrot.lane.b32.xlu1 %v1202_v0, %s1167_s17 }
 0x44d   : > { %473 = vrot.lane.b32.xlu1 %v1205_v1, %s1167_s17 }
 0x451   : > { %469 = vrot.lane.b32.xlu1 %v1205_v1, %s1168_s18 }
 0x454   : > { %407 = vrot.lane.b32.xlu0 %v1205_v1, %s1166_s16 }
 0x458   : > { %467 = vrot.lane.b32.xlu0 %v1202_v0, %s1168_s18 }
 0x4c5   : > { %v393_v21 = vpop.xlane.xlu1 %392 }
 0x4c7   : > { %v396_v22 = vpop.xlane.xlu0 %395 }
 0x4c8   : > { %1123 = vrcp.f32 %v396_v22 }
 0x4c9   : > { %1125 = vrcp.f32 %v393_v21  ;;  %v472_v26 = vpop.permute.xlu1 %471 }
 0x4ca   : > { %v482_v34 = vsel %vm133_vm0, %v472_v26, 0 }
 0x4cb   : > { %v390_v23 = vpop.xlane.xlu0 %389 }
 0x4cc   : > { %1127 = vrcp.f32 %v390_v23 }
 0x4cd   : > { %v474_v38 = vpop.permute.xlu1 %473 }
 0x4ce   : > { %v485_v39 = vsel %vm133_vm0, %v474_v38, 0 }
 0x4cf   : > { %v408_v24 = vpop.permute.xlu0 %407 }
 0x4d0   : > { %v417_v25 = vand.u32 %v408_v24, %v1228_v36 }
 0x4d1   : > { %v470_v40 = vpop.permute.xlu1 %469 }
 0x4d2   : > { %1018 = vmatprep.subr.bf16.mxu0 %v417_v25  ;;  %v1124_v27 = vpop.eup %1123 }
 0x4d3   : > { %1019 = vmatpush3.bf16.msra.mxu0 %v417_v25  ;;  %v1126_v28 = vpop.eup %1125  ;;  %v402_v30 = vmul.f32 %v1124_v27, %v1120_v17  ;;  %v468_v37 = vpop.permute.xlu0 %467 }
 0x4d4   : > { %1060 = vmatprep.subr.msk.bf16.mxu0 %vm133_vm0, %v472_v26  ;;  %v401_v32 = vmul.f32 %v1126_v28, %v1118_v15 }
 0x4d5   : > { %v404_v35 = vpack.c.bf16 %v402_v30, %v402_v30 }
 0x4d6   : > { %v1128_v29 = vpop.eup %1127 }
 0x4d7   : > { %v400_v31 = vmul.f32 %v1128_v29, %v1122_v19 }
 0x4d9   : > { %v403_v33 = vpack.c.bf16 %v401_v32, %v400_v31 }
 0x4db   : > { %1020 = vmatprep.mubr.msk.bf16.mxu0 %vm197_vm2, %v403_v33 }
 0x4dc   : > { %1021 = vmatmul.mubr.msk.bf16.vlgmr.msra.gmra.mrb[4].mxu0 %vm197_vm2, %v404_v35 }
 0x4dd   : > { %1025 = vmatpush3.bf16.xpose.msra.mxu0 %v482_v34  ;;  %1028 = vmatprep.mubr.msk.bf16.mxu0 %vm133_vm0, %v468_v37 }
 0x4de   : > { %1061 = vmatprep.subr.msk.bf16.mxu0 %vm133_vm0, %v474_v38 }
 0x4e5   : > { %1027 = vmatpush3.bf16.xpose.msra.mxu0 %v485_v39 }
 0x4ec   : > { %1029 = vmatmul.mubr.msk.bf16.vlgmr.msra.gmra.mrb[8].mxu0 %vm133_vm0, %v470_v40 }
 0x5af   : > { %v1268_v41 = vpop.f32.mrb[4].mxu0 }
 0x5b0   : > { %v1270_v42 = vpop.f32.mrb[5].mxu0 }
 0x5b1   : > { %v1088_v43 = vpack.i.bf16 %v1270_v42, %v1268_v41  ;;  %v1023_v44 = vpop.f32.mrb[6].mxu0 }
 0x5b2   : > { %v1274_v45 = vpop.f32.mrb[7].mxu0 }
 0x5bf   : > { %v1030_v46 = vpop.f32.mrb[8].mxu0 }
 0x5c0   : > { %v521_v47 = vpop.f32.mrb[9].mxu0  ;;  %v537_v51 = vmul.f32 2.828427, %v1030_v46 }
 0x5c1   : > { %v535_v48 = vmul.f32 2.828427, %v521_v47  ;;  %v1031_v49 = vpop.f32.mrb[10].mxu0 }
 0x5c2   : > { %v524_v50 = vpop.f32.mrb[11].mxu0  ;;  %v544_v58 = vsel %vm204_vm1, %v537_v51, -inf }
 0x5c3   : > { %v536_v52 = vmul.f32 2.828427, %v524_v50  ;;  %v538_v55 = vsel %vm197_vm2, %v535_v48, -inf }
 0x5c4   : > { %539 = vmax.xlane.f32.xlu0 %v538_v55 }
 0x5c5   : > { %v541_v57 = vsel %vm197_vm2, %v536_v52, -inf }
 0x5c6   : > { %542 = vmax.xlane.f32.xlu1 %v541_v57 }
 0x5c8   : > { %545 = vmax.xlane.f32.xlu0 %v544_v58 }
 0x5d7   : > { %573 = vrot.lane.b32.xlu1 %v1202_v0, %s1169_s19 }
 0x651   : > { %v540_v59 = vpop.xlane.xlu0 %539 }
 0x652   : > { %v547_v61 = vsub.f32 %v535_v48, %v540_v59 }
 0x653   : > { %v543_v60 = vpop.xlane.xlu1 %542 }
 0x654   : > { %v548_v62 = vsub.f32 %v536_v52, %v543_v60  ;;  %v550_v5 = vmul.f32 1.442695, %v547_v61 }
 0x655   : > { %v546_v63 = vpop.xlane.xlu0 %545 }
 0x656   : > { %v552_v2 = vmul.f32 1.442695, %v548_v62  ;;  %v549_v3 = vsub.f32 %v537_v51, %v546_v63 }
 0x657   : > { %v574_v4 = vpop.permute.xlu1 %573 }
 0x658   : > { %1129 = vpow2.f32 %v552_v2  ;;  %v554_v6 = vmul.f32 1.442695, %v549_v3  ;;  %1032 = vmatprep.subr.bf16.mxu1 %v574_v4 }
 0x659   : > { %1033 = vmatpush3.bf16.msra.mxu1 %v574_v4 }
 0x65a   : > { %1131 = vpow2.f32 %v554_v6 }
 0x65b   : > { %1133 = vpow2.f32 %v550_v5 }
 0x662   : > { %v1130_v7 = vpop.eup %1129 }
 0x663   : > { %v559_v8 = vsel %vm197_vm2, %v1130_v7, 0.0 }
 0x664   : > { %v1132_v9 = vpop.eup %1131  ;;  %560 = vadd.xlane.f32.xlu1 %v559_v8 }
 0x665   : > { %v562_v10 = vsel %vm204_vm1, %v1132_v9, 0.0  ;;  %v1134_v11 = vpop.eup %1133 }
 0x666   : > { %563 = vadd.xlane.f32.xlu0 %v562_v10  ;;  %v556_v12 = vsel %vm197_vm2, %v1134_v11, 0.0 }
 0x66a   : > { %557 = vadd.xlane.f32.xlu0 %v556_v12 }
 0x675   : > { %639 = vrot.lane.b32.xlu1 %v1202_v0, %s1170_s20 }
 0x679   : > { %641 = vrot.lane.b32.xlu1 %v1205_v1, %s1170_s20 }
 0x67d   : > { %637 = vrot.lane.b32.xlu1 %v1205_v1, %s1171_s21 }
 0x680   : > { %575 = vrot.lane.b32.xlu0 %v1205_v1, %s1169_s19 }
 0x684   : > { %635 = vrot.lane.b32.xlu0 %v1202_v0, %s1171_s21 }
 0x6f1   : > { %v561_v13 = vpop.xlane.xlu1 %560 }
 0x6f3   : > { %v564_v14 = vpop.xlane.xlu0 %563 }
 0x6f4   : > { %1135 = vrcp.f32 %v564_v14 }
 0x6f5   : > { %1137 = vrcp.f32 %v561_v13  ;;  %v640_v18 = vpop.permute.xlu1 %639 }
 0x6f6   : > { %v650_v26 = vsel %vm133_vm0, %v640_v18, 0 }
 0x6f7   : > { %v558_v15 = vpop.xlane.xlu0 %557 }
 0x6f8   : > { %1139 = vrcp.f32 %v558_v15 }
 0x6f9   : > { %v642_v29 = vpop.permute.xlu1 %641 }
 0x6fa   : > { %v653_v30 = vsel %vm133_vm0, %v642_v29, 0 }
 0x6fb   : > { %v576_v16 = vpop.permute.xlu0 %575 }
 0x6fc   : > { %v585_v17 = vand.u32 %v576_v16, %v1228_v36 }
 0x6fd   : > { %v638_v31 = vpop.permute.xlu1 %637 }
 0x6fe   : > { %1034 = vmatprep.subr.bf16.mxu1 %v585_v17  ;;  %v1136_v19 = vpop.eup %1135 }
 0x6ff   : > { %1035 = vmatpush3.bf16.msra.mxu1 %v585_v17  ;;  %v1138_v20 = vpop.eup %1137  ;;  %v570_v22 = vmul.f32 %v1136_v19, %v1132_v9  ;;  %v636_v28 = vpop.permute.xlu0 %635 }
 0x700   : > { %1062 = vmatprep.subr.msk.bf16.mxu1 %vm133_vm0, %v640_v18  ;;  %v569_v24 = vmul.f32 %v1138_v20, %v1130_v7 }
 0x701   : > { %v572_v27 = vpack.c.bf16 %v570_v22, %v570_v22 }
 0x702   : > { %v1140_v21 = vpop.eup %1139 }
 0x703   : > { %v568_v23 = vmul.f32 %v1140_v21, %v1134_v11 }
 0x705   : > { %v571_v25 = vpack.c.bf16 %v569_v24, %v568_v23 }
 0x707   : > { %1036 = vmatprep.mubr.msk.bf16.mxu1 %vm197_vm2, %v571_v25 }
 0x708   : > { %1037 = vmatmul.mubr.msk.bf16.vlgmr.msra.gmra.mrb[8].mxu1 %vm197_vm2, %v572_v27 }
 0x709   : > { %1041 = vmatpush3.bf16.xpose.msra.mxu1 %v650_v26  ;;  %1044 = vmatprep.mubr.msk.bf16.mxu1 %vm133_vm0, %v636_v28 }
 0x70a   : > { %1063 = vmatprep.subr.msk.bf16.mxu1 %vm133_vm0, %v642_v29 }
 0x711   : > { %1043 = vmatpush3.bf16.xpose.msra.mxu1 %v653_v30 }
 0x718   : > { %1045 = vmatmul.mubr.msk.bf16.vlgmr.msra.gmra.mrb[12].mxu1 %vm133_vm0, %v638_v31 }
 0x7db   : > { %v1038_v32 = vpop.f32.mrb[8].mxu1 }
 0x7dc   : > { %v621_v33 = vpop.f32.mrb[9].mxu1 }
 0x7dd   : > { %v1093_v34 = vpack.i.bf16 %v621_v33, %v1038_v32  ;;  %v1039_v35 = vpop.f32.mrb[10].mxu1 }
 0x7de   : > { %v624_v37 = vpop.f32.mrb[11].mxu1 }
 0x7eb   : > { %v1046_v38 = vpop.f32.mrb[12].mxu1 }
 0x7ec   : > { %v689_v39 = vpop.f32.mrb[13].mxu1  ;;  %v705_v47 = vmul.f32 2.828427, %v1046_v38  ;;  %v869_v38 = vld [vmem:[%s116_s28 + $0x8] sm:$0x1] }
 0x7ed   : > { %v703_v40 = vmul.f32 2.828427, %v689_v39  ;;  %v1047_v44 = vpop.f32.mrb[14].mxu1 }
 0x7ee   : > { %v692_v46 = vpop.f32.mrb[15].mxu1  ;;  %v712_v51 = vsel %vm204_vm1, %v705_v47, -inf }
 0x7ef   : > { %v704_v48 = vmul.f32 2.828427, %v692_v46  ;;  %v706_v49 = vsel %vm197_vm2, %v703_v40, -inf }
 0x7f0   : > { %707 = vmax.xlane.f32.xlu0 %v706_v49 }
 0x7f1   : > { %v709_v50 = vsel %vm197_vm2, %v704_v48, -inf }
 0x7f2   : > { %710 = vmax.xlane.f32.xlu1 %v709_v50 }
 0x7f4   : > { %713 = vmax.xlane.f32.xlu0 %v712_v51 }
 0x87d   : > { %v708_v52 = vpop.xlane.xlu0 %707 }
 0x87e   : > { %v715_v57 = vsub.f32 %v703_v40, %v708_v52 }
 0x87f   : > { %v711_v55 = vpop.xlane.xlu1 %710 }
 0x880   : > { %v716_v58 = vsub.f32 %v704_v48, %v711_v55  ;;  %v718_v62 = vmul.f32 1.442695, %v715_v57 }
 0x881   : > { %v714_v59 = vpop.xlane.xlu0 %713 }
 0x882   : > { %v720_v60 = vmul.f32 1.442695, %v716_v58  ;;  %v717_v61 = vsub.f32 %v705_v47, %v714_v59 }
 0x884   : > { %1141 = vpow2.f32 %v720_v60  ;;  %v722_v63 = vmul.f32 1.442695, %v717_v61 }
 0x886   : > { %1143 = vpow2.f32 %v722_v63 }
 0x887   : > { %1145 = vpow2.f32 %v718_v62 }
 0x88e   : > { %v1142_v2 = vpop.eup %1141 }
 0x88f   : > { %v727_v3 = vsel %vm197_vm2, %v1142_v2, 0.0 }
 0x890   : > { %v1144_v4 = vpop.eup %1143  ;;  %728 = vadd.xlane.f32.xlu1 %v727_v3 }
 0x891   : > { %v730_v5 = vsel %vm204_vm1, %v1144_v4, 0.0  ;;  %v1146_v6 = vpop.eup %1145 }
 0x892   : > { %731 = vadd.xlane.f32.xlu0 %v730_v5  ;;  %v724_v7 = vsel %vm197_vm2, %v1146_v6, 0.0 }
 0x896   : > { %725 = vadd.xlane.f32.xlu0 %v724_v7 }
 0x8a1   : > { %741 = vrot.lane.b32.xlu1 %v1202_v0, %s1172_s22 }
 0x8a5   : > { %1089 = vrot.lane.b32.xlu1 %v1088_v43, %s1173_s23 }
 0x8a9   : > { %808 = vrot.lane.b32.xlu1 %v1274_v45, %s1173_s23 }
 0x8ac   : > { %743 = vrot.lane.b32.xlu0 %v1205_v1, %s1172_s22 }
 0x8ad   : > { %820 = vrot.lane.b32.xlu1 %v624_v37, %s1174_s24 }
 0x8b0   : > { %1094 = vrot.lane.b32.xlu0 %v1093_v34, %s1174_s24 }
 0x91d   : > { %v729_v8 = vpop.xlane.xlu1 %728 }
 0x91f   : > { %v732_v9 = vpop.xlane.xlu0 %731 }
 0x920   : > { %1147 = vrcp.f32 %v732_v9 }
 0x921   : > { %v742_v10 = vpop.permute.xlu1 %741  ;;  %1149 = vrcp.f32 %v729_v8 }
 0x922   : > { %1048 = vmatprep.subr.bf16.mxu0 %v742_v10 }
 0x923   : > { %v726_v11 = vpop.xlane.xlu0 %725  ;;  %1049 = vmatpush3.bf16.msra.mxu0 %v742_v10 }
 0x924   : > { %1151 = vrcp.f32 %v726_v11 }
 0x927   : > { %v744_v0 = vpop.permute.xlu0 %743 }
 0x928   : > { %v753_v41 = vand.u32 %v744_v0, %v1228_v36  ;;  %v1090_v36 = vpop.permute.xlu1 %1089 }
 0x929   : > { %v1092_v22 = vunpack.i.h.bf16 %v1090_v36  ;;  %v1091_v24 = vunpack.i.l.bf16 %v1090_v36 }
 0x92a   : > { %1050 = vmatprep.subr.bf16.mxu0 %v753_v41  ;;  %v1148_v42 = vpop.eup %1147 }
 0x92b   : > { %1051 = vmatpush3.bf16.msra.mxu0 %v753_v41  ;;  %v1150_v43 = vpop.eup %1149  ;;  %v738_v45 = vmul.f32 %v1148_v42, %v1144_v4  ;;  %v1095_v23 = vpop.permute.xlu0 %1094  ;;  %v839_v28 = vsel %vm133_vm0, %v1241_v54, %v1092_v22  ;;  %v841_v30 = vsel %vm133_vm0, %v1239_v53, %v1091_v24 }
 0x92c   : > { %v737_v13 = vmul.f32 %v1150_v43, %v1142_v2  ;;  %v809_v21 = vpop.permute.xlu1 %808  ;;  %v1097_v26 = vunpack.i.h.bf16 %v1095_v23  ;;  %v1096_v27 = vunpack.i.l.bf16 %v1095_v23 }
 0x92d   : > { %v740_v15 = vpack.c.bf16 %v738_v45, %v738_v45  ;;  %v840_v29 = vsel %vm133_vm0, %v1243_v56, %v809_v21 }
 0x92e   : > { %v1152_v1 = vpop.eup %1151  ;;  %v843_v56 = vsel %vm842_vm4, %v839_v28, %v1097_v26  ;;  %v845_v53 = vsel %vm842_vm4, %v841_v30, %v1096_v27 }
 0x92f   : > { %v736_v12 = vmul.f32 %v1152_v1, %v1146_v6 }
 0x930   : > { %v821_v25 = vpop.permute.xlu1 %820 }
 0x931   : > { %v739_v14 = vpack.c.bf16 %v737_v13, %v736_v12  ;;  %v844_v31 = vsel %vm842_vm4, %v840_v29, %v821_v25 }
 0x933   : > { %1052 = vmatprep.mubr.msk.bf16.mxu0 %vm197_vm2, %v739_v14 }
 0x934   : > { %1053 = vmatmul.mubr.msk.bf16.vlgmr.msra.gmra.mrb[12].mxu0 %vm197_vm2, %v740_v15 }
 0xa07   : > { %v1054_v16 = vpop.f32.mrb[12].mxu0 }
 0xa08   : > { %v789_v17 = vpop.f32.mrb[13].mxu0 }
 0xa09   : > { %v1098_v18 = vpack.i.bf16 %v789_v17, %v1054_v16  ;;  %v1055_v19 = vpop.f32.mrb[14].mxu0 }
 0xa0a   : > { %v792_v20 = vpop.f32.mrb[15].mxu0 }
 0xa0b   : > { %1099 = vrot.lane.b32.xlu0 %v1098_v18, %s1175_s25  ;;  %832 = vrot.lane.b32.xlu1 %v792_v20, %s1175_s25 }
 0xa7d   : > { %v1100_v32 = vpop.permute.xlu0 %1099  ;;  %v833_v33 = vpop.permute.xlu1 %832 }
 0xa7e   : > { %v1102_v34 = vunpack.i.h.bf16 %v1100_v32  ;;  %v1101_v35 = vunpack.i.l.bf16 %v1100_v32  ;;  %v848_v54 = vsel %vm846_vm5, %v844_v31, %v833_v33 }
 0xa7f   : > { %v958_v37 = vpack.c.bf16 %v848_v54, %v848_v54 }
 0xa80   : > { %v847_v39 = vsel %vm846_vm5, %v843_v56, %v1102_v34  ;;  %v849_v40 = vsel %vm846_vm5, %v845_v53, %v1101_v35 }
 0xa81   : > { %v957_v44 = vpack.c.bf16 %v847_v39, %v847_v39  ;;  %v959_v46 = vpack.c.bf16 %v849_v40, %v849_v40  ;;  %865 = vst.msk [vmem:[%s116_s28 + $0x4] sm:$0xf] %vm863_vm8, %v958_v37 }
 0xa83   : > { %864 = vst.msk [vmem:[%s116_s28] sm:$0xf] %vm863_vm8, %v957_v44  ;;  %v870_v47 = vsel %vm868_vm9, %v959_v46, %v869_v38 }
 0xa84   : > { %871 = vst [vmem:[%s116_s28 + $0x8] sm:$0x1] %v870_v47 }
 0xa85 PF: > { %s11_s6 = sadd.s32 1, %s1159_s6  }
 0xa86   : > { %p8_p4 = scmp.ge.s32.totalorder %s11_s6, 4  }
 0xa88   :  { %10 = sbr.rel (!%p8_p4) target bundleno = 1 (0x1), region = 54 }

// kernel: _lambda_.16
= control target key start
LH: loop header
LB: loop body
LE: loop exit
PB: predicated region body
PF: predicated region fallthrough
CT: control target
= control target key end

     0   :  { %vm19_vm0 = vcmask 523264   ;;  %v401_v0 = vmov 0.0   ;;  %vm402_vm1 = vmmov 0   ;;  %vm65_vm2 = vcmask 261120   ;;  %s513_s1 = inlined_call_operand.vmem [shape: bf16[32,64], index: 1, kind: input, shape index: {}]   ;;  %s514_s0 = inlined_call_operand.vmem [shape: bf16[34,32], index: 0, kind: input, shape index: {}]   ;;  %s515_s2 = inlined_call_operand.vmem [shape: f32[1,64], index: 2, kind: input, shape index: {}]   ;;  %s516_s3 = inlined_call_operand.vmem [shape: bf16[34,64], index: 3, kind: output, shape index: {}]  }
   0x1   :  { %354 = vmatprep.subr.bf16.mxu0 %v401_v0  ;;  %370 = vmatprep.subr.bf16.mxu1 %v401_v0  ;;  %v376_v1 = vld [vmem:[%s513_s1] sm:$0xff]   ;;  %20 = vst.msk [vmem:[#allocation2] sm:$0xff] %vm19_vm0, %v401_v0  ;;  %21 = vst.msk [vmem:[#allocation2 + $0x8] sm:$0xff] %vm19_vm0, %v401_v0  ;;  %v377_v2 = vld [vmem:[%s513_s1 + $0x8] sm:$0xff]   ;;  %vm24_vm3 = vcmask 517120   ;;  %vm319_vm6 = vcmask 519168  }
   0x2   :  { %22 = vst.msk [vmem:[#allocation2 + $0x10] sm:$0xff] %vm19_vm0, %v401_v0  ;;  %23 = vst.msk [vmem:[#allocation2 + $0x18] sm:$0xff] %vm19_vm0, %v401_v0  ;;  %358 = vmatprep.mubr.msk.bf16.mxu0 %vm402_vm1, %v401_v0  ;;  %362 = vmatprep.mubr.msk.bf16.mxu1 %vm402_vm1, %v401_v0  ;;  %v378_v3 = vld [vmem:[%s514_s0] sm:$0xff]   ;;  %v379_v4 = vld [vmem:[%s514_s0 + $0x8] sm:$0xff]   ;;  %vm324_vm10 = vcmask 516096  }
   0x3   :  { %355 = vmatpush3.bf16.msra.mxu0 %v376_v1  ;;  %372 = vmatpush3.bf16.msra.mxu1 %v376_v1  ;;  %v380_v5 = vld [vmem:[%s514_s0 + $0x10] ss:$0 sps:$4 sm:$0x11]   ;;  %25 = vst.msk [vmem:[#allocation2 + $0x20] sm:$0x3] %vm24_vm3, %v401_v0 }
   0x4   :  { %356 = vmatprep.subr.bf16.mxu0 %v401_v0  ;;  %371 = vmatprep.subr.bf16.mxu1 %v401_v0  ;;  %v338_v23 = vld [vmem:[%s515_s2] ss:$0 sm:$0xff] }
   0x7   :  { %357 = vmatpush3.bf16.msra.mxu0 %v377_v2  ;;  %373 = vmatpush3.bf16.msra.mxu1 %v377_v2 }
   0x8   :  { %v26_v6 = vld [vmem:[#allocation2] sm:$0xff]  ;;  %v27_v10 = vld [vmem:[#allocation2 + $0x8] sm:$0xff] }
   0x9   :  { %v28_v7 = vld [vmem:[#allocation2 + $0x10] sm:$0xff]  ;;  %v29_v11 = vld [vmem:[#allocation2 + $0x18] sm:$0xff] }
   0xa   :  { %359 = vmatmul.mubr.msk.bf16.vlgmr.msra.gmra.mrb[0].mxu0 %vm65_vm2, %v378_v3  ;;  %363 = vmatmul.mubr.msk.bf16.vlgmr.msra.gmra.mrb[0].mxu1 %vm65_vm2, %v379_v4  ;;  %v30_v22 = vld [vmem:[#allocation2 + $0x20] sm:$0x3] }
   0xb   :  { %366 = vmatprep.mubr.msk.bf16.mxu1 %vm402_vm1, %v401_v0 }
  0x12   :  { %367 = vmatmul.mubr.msk.bf16.gmra.mrb[4].mxu1 %vm65_vm2, %v380_v5 }
  0xdd   :  { %v109_v8 = vpop.f32.mrb[0].mxu0  ;;  %v117_v9 = vpop.f32.mrb[0].mxu1 }
  0xde   :  { %v131_v12 = vadd.f32 %v109_v8, %v26_v6  ;;  %v133_v13 = vadd.f32 %v117_v9, %v28_v7  ;;  %v360_v14 = vpop.f32.mrb[1].mxu0  ;;  %v364_v15 = vpop.f32.mrb[1].mxu1 }
  0xdf   :  { %v112_v16 = vpop.f32.mrb[2].mxu0  ;;  %v120_v17 = vpop.f32.mrb[2].mxu1 }
  0xe0   :  { %137 = vst.msk [vmem:[#allocation2] sm:$0xff] %vm19_vm0, %v131_v12  ;;  %139 = vst.msk [vmem:[#allocation2 + $0x10] sm:$0xff] %vm19_vm0, %v133_v13  ;;  %v132_v18 = vadd.f32 %v112_v16, %v27_v10  ;;  %v134_v19 = vadd.f32 %v120_v17, %v29_v11  ;;  %v365_v20 = vpop.f32.mrb[3].mxu1  ;;  %v361_v21 = vpop.f32.mrb[3].mxu0 }
  0xe2   :  { %138 = vst.msk [vmem:[#allocation2 + $0x8] sm:$0xff] %vm19_vm0, %v132_v18  ;;  %140 = vst.msk [vmem:[#allocation2 + $0x18] sm:$0xff] %vm19_vm0, %v134_v19 }
  0xe5   :  { %v125_v24 = vpop.f32.mrb[4].mxu1 }
  0xe6   :  { %v135_v25 = vadd.f32 %v125_v24, %v30_v22  ;;  %v368_v26 = vpop.f32.mrb[5].mxu1 }
  0xe7   :  { %v146_v27 = vld [vmem:[#allocation2] sm:$0xff]  ;;  %v148_v28 = vld [vmem:[#allocation2 + $0x10] sm:$0xff]  ;;  %v128_v29 = vpop.f32.mrb[6].mxu1 }
  0xe8   :  { %v453_v30 = vadd.f32 %v338_v23, %v146_v27  ;;  %v455_v31 = vadd.f32 %v338_v23, %v148_v28  ;;  %142 = vst.msk [vmem:[#allocation2 + $0x20] sm:$0x3] %vm24_vm3, %v135_v25  ;;  %v369_v32 = vpop.f32.mrb[7].mxu1 }
  0xe9   :  { %v147_v33 = vld [vmem:[#allocation2 + $0x8] sm:$0xff]  ;;  %v149_v34 = vld [vmem:[#allocation2 + $0x18] sm:$0xff] }
  0xea   :  { %v459_v35 = vmul.f32 0.70710677, %v453_v30  ;;  %v462_v36 = vmul.f32 0.70710677, %v455_v31  ;;  %v464_v37 = vadd.f32 %v338_v23, %v147_v33  ;;  %v466_v38 = vadd.f32 %v338_v23, %v149_v34 }
  0xec   :  { %v173_v39 = vand.u32 2147483647, %v459_v35  ;;  %v175_v40 = vand.u32 2147483647, %v462_v36  ;;  %v471_v41 = vmul.f32 0.70710677, %v464_v37 }
  0xed   :  { %v474_v42 = vmul.f32 0.70710677, %v466_v38  ;;  %vm273_vm4 = vcmp.ge.f32.partialorder %v459_v35, 0.0  ;;  %vm275_vm5 = vcmp.ge.f32.partialorder %v462_v36, 0.0 }
  0xee   :  { %v178_v43 = vmul.f32 0.3275911, %v173_v39  ;;  %v180_v44 = vmul.f32 0.3275911, %v175_v40  ;;  %v174_v45 = vand.u32 2147483647, %v471_v41 }
  0xef   :  { %v176_v46 = vand.u32 2147483647, %v474_v42  ;;  %v150_v49 = vld [vmem:[#allocation2 + $0x20] sm:$0x3]  ;;  %v243_v57 = vsub.f32 0.0, %v173_v39  ;;  %v245_v59 = vsub.f32 0.0, %v175_v40 }
  0xf0   :  { %v183_v47 = vadd.f32 1.0, %v178_v43  ;;  %v185_v48 = vadd.f32 1.0, %v180_v44  ;;  %v179_v50 = vmul.f32 0.3275911, %v174_v45  ;;  %v478_v52 = vadd.f32 %v338_v23, %v150_v49 }
  0xf1   :  { %v181_v51 = vmul.f32 0.3275911, %v176_v46  ;;  %v248_v62 = vmul.f32 %v243_v57, %v173_v39  ;;  %v244_v63 = vsub.f32 0.0, %v174_v45  ;;  %v250_v2 = vmul.f32 %v245_v59, %v175_v40 }
  0xf2   :  { %381 = vrcp.f32 %v183_v47  ;;  %v184_v53 = vadd.f32 1.0, %v179_v50  ;;  %v481_v55 = vmul.f32 0.70710677, %v478_v52  ;;  %v246_v4 = vsub.f32 0.0, %v176_v46 }
  0xf3   :  { %383 = vrcp.f32 %v185_v48  ;;  %v186_v54 = vadd.f32 1.0, %v181_v51  ;;  %v253_v7 = vmul.f32 1.442695, %v248_v62  ;;  %v249_v9 = vmul.f32 %v244_v63, %v174_v45 }
  0xf4   :  { %385 = vrcp.f32 %v184_v53  ;;  %v177_v56 = vand.u32 2147483647, %v481_v55  ;;  %v257_v11 = vmul.f32 1.442695, %v250_v2  ;;  %v251_v15 = vmul.f32 %v246_v4, %v176_v46 }
  0xf5   :  { %387 = vrcp.f32 %v186_v54  ;;  %v255_v21 = vmul.f32 1.442695, %v249_v9  ;;  %vm274_vm7 = vcmp.ge.f32.partialorder %v471_v41, 0.0  ;;  %vm276_vm8 = vcmp.ge.f32.partialorder %v474_v42, 0.0 }
  0xf6   :  { %v182_v58 = vmul.f32 0.3275911, %v177_v56  ;;  %v247_v16 = vsub.f32 0.0, %v177_v56  ;;  %v259_v27 = vmul.f32 1.442695, %v251_v15  ;;  %v166_v41 = vmul.f32 0.5, %v466_v38 }
  0xf7   :  { %vm277_vm9 = vcmp.ge.f32.partialorder %v481_v55, 0.0  ;;  %v167_v38 = vmul.f32 0.5, %v478_v52 }
  0xf8   :  { %v187_v60 = vadd.f32 1.0, %v182_v58  ;;  %v252_v28 = vmul.f32 %v247_v16, %v177_v56 }
  0xfa   :  { %389 = vrcp.f32 %v187_v60  ;;  %v261_v47 = vmul.f32 1.442695, %v252_v28 }
  0xfb   :  { %391 = vpow2.f32 %v253_v7 }
  0xfc   :  { %v382_v61 = vpop.eup %381  ;;  %393 = vpow2.f32 %v257_v11 }
  0xfd   :  { %v384_v0 = vpop.eup %383  ;;  %v198_v1 = vmul.f32 1.0614054, %v382_v61  ;;  %395 = vpow2.f32 %v255_v21 }
  0xfe   :  { %v200_v3 = vmul.f32 1.0614054, %v384_v0  ;;  %v386_v6 = vpop.eup %385  ;;  %397 = vpow2.f32 %v259_v27 }
  0xff   :  { %v203_v5 = vadd.f32 -1.4531521, %v198_v1  ;;  %v199_v12 = vmul.f32 1.0614054, %v386_v6  ;;  %v388_v13 = vpop.eup %387  ;;  %399 = vpow2.f32 %v261_v47 }
 0x100   :  { %v205_v8 = vadd.f32 -1.4531521, %v200_v3  ;;  %v201_v19 = vmul.f32 1.0614054, %v388_v13 }
 0x101   :  { %v208_v10 = vmul.f32 %v382_v61, %v203_v5  ;;  %v204_v18 = vadd.f32 -1.4531521, %v199_v12 }
 0x102   :  { %v210_v14 = vmul.f32 %v384_v0, %v205_v8  ;;  %v206_v24 = vadd.f32 -1.4531521, %v201_v19 }
 0x103   :  { %v213_v17 = vadd.f32 1.4214138, %v208_v10  ;;  %v209_v23 = vmul.f32 %v386_v6, %v204_v18 }
 0x104   :  { %v215_v20 = vadd.f32 1.4214138, %v210_v14  ;;  %v390_v25 = vpop.eup %389  ;;  %v211_v33 = vmul.f32 %v388_v13, %v206_v24 }
 0x105   :  { %v218_v22 = vmul.f32 %v382_v61, %v213_v17  ;;  %v214_v32 = vadd.f32 1.4214138, %v209_v23  ;;  %v202_v34 = vmul.f32 1.0614054, %v390_v25  ;;  %v392_v59 = vpop.eup %391 }
 0x106   :  { %v220_v26 = vmul.f32 %v384_v0, %v215_v20  ;;  %v216_v44 = vadd.f32 1.4214138, %v211_v33  ;;  %v394_v62 = vpop.eup %393 }
 0x107   :  { %v223_v29 = vadd.f32 -0.28449672, %v218_v22  ;;  %v219_v43 = vmul.f32 %v386_v6, %v214_v32  ;;  %v207_v45 = vadd.f32 -1.4531521, %v202_v34  ;;  %v396_v10 = vpop.eup %395  ;;  %v165_v22 = vmul.f32 0.5, %v455_v31 }
 0x108   :  { %v225_v39 = vadd.f32 -0.28449672, %v220_v26  ;;  %v221_v50 = vmul.f32 %v388_v13, %v216_v44  ;;  %v398_v16 = vpop.eup %397 }
 0x109   :  { %v228_v40 = vmul.f32 %v382_v61, %v223_v29  ;;  %v224_v49 = vadd.f32 -0.28449672, %v219_v43  ;;  %v212_v51 = vmul.f32 %v390_v25, %v207_v45  ;;  %v400_v28 = vpop.eup %399 }
 0x10a   :  { %v230_v46 = vmul.f32 %v384_v0, %v225_v39  ;;  %v226_v57 = vadd.f32 -0.28449672, %v221_v50 }
 0x10b   :  { %v233_v48 = vadd.f32 0.2548296, %v228_v40  ;;  %v229_v56 = vmul.f32 %v386_v6, %v224_v49  ;;  %v217_v58 = vadd.f32 1.4214138, %v212_v51 }
 0x10c   :  { %v235_v53 = vadd.f32 0.2548296, %v230_v46  ;;  %v231_v2 = vmul.f32 %v388_v13, %v226_v57 }
 0x10d   :  { %v238_v54 = vmul.f32 %v382_v61, %v233_v48  ;;  %v234_v1 = vadd.f32 0.2548296, %v229_v56  ;;  %v222_v3 = vmul.f32 %v390_v25, %v217_v58 }
 0x10e   :  { %v240_v60 = vmul.f32 %v384_v0, %v235_v53  ;;  %v236_v8 = vadd.f32 0.2548296, %v231_v2 }
 0x10f   :  { %v263_v63 = vmul.f32 %v392_v59, %v238_v54  ;;  %v239_v7 = vmul.f32 %v386_v6, %v234_v1  ;;  %v227_v9 = vadd.f32 -0.28449672, %v222_v3  ;;  %v163_v6 = vmul.f32 0.5, %v453_v30 }
 0x110   :  { %v265_v4 = vmul.f32 %v394_v62, %v240_v60  ;;  %v241_v14 = vmul.f32 %v388_v13, %v236_v8  ;;  %v164_v30 = vmul.f32 0.5, %v464_v37 }
 0x111   :  { %v268_v5 = vsub.f32 1.0, %v263_v63  ;;  %v264_v61 = vmul.f32 %v396_v10, %v239_v7  ;;  %v232_v15 = vmul.f32 %v390_v25, %v227_v9 }
 0x112   :  { %v270_v11 = vsub.f32 1.0, %v265_v4  ;;  %v266_v19 = vmul.f32 %v398_v16, %v241_v14 }
 0x113   :  { %v278_v12 = vsub.f32 0.0, %v268_v5  ;;  %v269_v18 = vsub.f32 1.0, %v264_v61  ;;  %v237_v20 = vadd.f32 0.2548296, %v232_v15 }
 0x114   :  { %v280_v0 = vsub.f32 0.0, %v270_v11  ;;  %v271_v13 = vsub.f32 1.0, %v266_v19 }
 0x115   :  { %v283_v17 = vsel %vm273_vm4, %v268_v5, %v278_v12  ;;  %v279_v26 = vsub.f32 0.0, %v269_v18  ;;  %v242_v27 = vmul.f32 %v390_v25, %v237_v20 }
 0x116   :  { %v288_v21 = vadd.f32 1.0, %v283_v17  ;;  %v285_v23 = vsel %vm275_vm5, %v270_v11, %v280_v0  ;;  %v281_v32 = vsub.f32 0.0, %v271_v13 }
 0x117   :  { %v290_v24 = vadd.f32 1.0, %v285_v23  ;;  %v284_v36 = vsel %vm274_vm7, %v269_v18, %v279_v26  ;;  %v267_v33 = vmul.f32 %v400_v28, %v242_v27 }
 0x118   :  { %v293_v29 = vmul.f32 %v288_v21, %v163_v6  ;;  %v289_v39 = vadd.f32 1.0, %v284_v36  ;;  %v286_v40 = vsel %vm276_vm8, %v271_v13, %v281_v32 }
 0x119   :  { %v295_v35 = vmul.f32 %v290_v24, %v165_v22  ;;  %v272_v43 = vsub.f32 1.0, %v267_v33  ;;  %v291_v44 = vadd.f32 1.0, %v286_v40 }
 0x11a   :  { %v344_v34 = vpack.c.bf16 %v293_v29, %v293_v29  ;;  %v294_v25 = vmul.f32 %v289_v39, %v164_v30 }
 0x11b   :  { %v346_v31 = vpack.c.bf16 %v295_v35, %v295_v35  ;;  %v282_v37 = vsub.f32 0.0, %v272_v43  ;;  %v296_v42 = vmul.f32 %v291_v44, %v166_v41 }
 0x11c   :  { %320 = vst.msk [vmem:[%s516_s3] sm:$0xf] %vm319_vm6, %v344_v34  ;;  %v345_v45 = vpack.c.bf16 %v294_v25, %v294_v25 }
 0x11d   :  { %322 = vst.msk [vmem:[%s516_s3 + $0x8] sm:$0xf] %vm319_vm6, %v346_v31  ;;  %v287_v46 = vsel %vm277_vm9, %v272_v43, %v282_v37  ;;  %v347_v47 = vpack.c.bf16 %v296_v42, %v296_v42 }
 0x11e   :  { %321 = vst.msk [vmem:[%s516_s3 + $0x4] sm:$0xf] %vm319_vm6, %v345_v45  ;;  %v292_v48 = vadd.f32 1.0, %v287_v46 }
 0x11f   :  { %323 = vst.msk [vmem:[%s516_s3 + $0xc] sm:$0xf] %vm319_vm6, %v347_v47 }
 0x120   :  { %v297_v49 = vmul.f32 %v292_v48, %v167_v38 }
 0x122   :  { %v348_v50 = vpack.c.bf16 %v297_v49, %v297_v49 }
 0x124   :  { %325 = vst.msk [vmem:[%s516_s3 + $0x10] sm:$0x1] %vm324_vm10, %v348_v50 }

// kernel: _lambda_.17
= control target key start
LH: loop header
LB: loop body
LE: loop exit
PB: predicated region body
PF: predicated region fallthrough
CT: control target
= control target key end

     0   :  { %vm28_vm0 = vcmask 261120   ;;  %v411_v0 = vmov 0.0   ;;  %vm412_vm1 = vmmov 0   ;;  %vm90_vm2 = vcmask 523264   ;;  %s529_s1 = inlined_call_operand.vmem [shape: bf16[64,32], index: 1, kind: input, shape index: {}]   ;;  %s530_s0 = inlined_call_operand.vmem [shape: bf16[34,64], index: 0, kind: input, shape index: {}]   ;;  %s531_s3 = inlined_call_operand.vmem [shape: bf16[34,32], index: 3, kind: input, shape index: {}]   ;;  %s532_s2 = inlined_call_operand.vmem [shape: f32[1,32], index: 2, kind: input, shape index: {}]   ;;  %s533_s4 = inlined_call_operand.vmem [shape: f32[1,32], index: 4, kind: input, shape index: {}]   ;;  %s534_s5 = inlined_call_operand.vmem [shape: f32[1,32], index: 5, kind: input, shape index: {}]   ;;  %s535_s6 = inlined_call_operand.vmem [shape: bf16[34,32], index: 6, kind: output, shape index: {}]  }
   0x1   :  { %364 = vmatprep.subr.bf16.mxu0 %v411_v0  ;;  %384 = vmatprep.subr.bf16.mxu1 %v411_v0  ;;  %v394_v1 = vld [vmem:[%s529_s1] sm:$0xff]   ;;  %29 = vst.msk [vmem:[#allocation2] sm:$0xff] %vm28_vm0, %v411_v0  ;;  %30 = vst.msk [vmem:[#allocation2 + $0x8] sm:$0xff] %vm28_vm0, %v411_v0  ;;  %v395_v2 = vld [vmem:[%s529_s1 + $0x8] sm:$0xff]   ;;  %vm33_vm3 = vcmask 254976   ;;  %vm314_vm4 = vcmask 257024  }
   0x2   :  { %31 = vst.msk [vmem:[#allocation2 + $0x10] sm:$0xff] %vm28_vm0, %v411_v0  ;;  %32 = vst.msk [vmem:[#allocation2 + $0x18] sm:$0xff] %vm28_vm0, %v411_v0  ;;  %372 = vmatprep.mubr.msk.bf16.mxu0 %vm412_vm1, %v411_v0  ;;  %376 = vmatprep.mubr.msk.bf16.mxu1 %vm412_vm1, %v411_v0  ;;  %v396_v3 = vld [vmem:[%s529_s1 + $0x10] sm:$0xff]   ;;  %v397_v4 = vld [vmem:[%s529_s1 + $0x18] sm:$0xff]   ;;  %vm319_vm5 = vcmask 253952  }
   0x3   :  { %365 = vmatpush3.bf16.msra.mxu0 %v394_v1  ;;  %388 = vmatpush3.bf16.msra.mxu1 %v394_v1  ;;  %v398_v5 = vld [vmem:[%s530_s0] sm:$0xff]   ;;  %v399_v6 = vld [vmem:[%s530_s0 + $0x8] sm:$0xff]   ;;  %v400_v7 = vld [vmem:[%s530_s0 + $0x10] ss:$0 sps:$4 sm:$0x11]  }
   0x4   :  { %366 = vmatprep.subr.bf16.mxu0 %v411_v0  ;;  %385 = vmatprep.subr.bf16.mxu1 %v411_v0  ;;  %34 = vst.msk [vmem:[#allocation2 + $0x20] sm:$0x3] %vm33_vm3, %v411_v0  ;;  %v356_v25 = vld [vmem:[%s531_s3 + $0x8] sm:$0xff]   ;;  %v349_v26 = vld [vmem:[%s531_s3] sm:$0xff]   ;;  %v192_v47 = vld [vmem:[%s531_s3 + $0x10] sm:$0x1] }
   0x5   :  { %v335_v28 = vld [vmem:[%s532_s2] ss:$0 sm:$0xff]  ;;  %v354_v31 = vunpack.c.l.bf16 %v356_v25  ;;  %v350_v32 = vunpack.c.l.bf16 %v349_v26  ;;  %v355_v39 = vunpack.c.h.bf16 %v356_v25  ;;  %v351_v40 = vunpack.c.h.bf16 %v349_v26 }
   0x6   :  { %v197_v52 = vunpack.c.l.bf16 %v192_v47 }
   0x7   :  { %367 = vmatpush3.bf16.msra.mxu0 %v395_v2  ;;  %389 = vmatpush3.bf16.msra.mxu1 %v395_v2 }
   0x8   :  { %368 = vmatprep.subr.bf16.mxu0 %v411_v0  ;;  %386 = vmatprep.subr.bf16.mxu1 %v411_v0  ;;  %v35_v8 = vld [vmem:[#allocation2] sm:$0xff]  ;;  %v36_v12 = vld [vmem:[#allocation2 + $0x8] sm:$0xff] }
   0x9   :  { %v37_v9 = vld [vmem:[#allocation2 + $0x10] sm:$0xff]  ;;  %v38_v13 = vld [vmem:[#allocation2 + $0x18] sm:$0xff] }
   0xb   :  { %369 = vmatpush3.bf16.msra.mxu0 %v396_v3  ;;  %390 = vmatpush3.bf16.msra.mxu1 %v396_v3  ;;  %v39_v24 = vld [vmem:[#allocation2 + $0x20] sm:$0x3] }
   0xc   :  { %370 = vmatprep.subr.bf16.mxu0 %v411_v0  ;;  %387 = vmatprep.subr.bf16.mxu1 %v411_v0 }
   0xf   :  { %371 = vmatpush3.bf16.msra.mxu0 %v397_v4  ;;  %391 = vmatpush3.bf16.msra.mxu1 %v397_v4 }
  0x12   :  { %373 = vmatmul.mubr.msk.bf16.vlgmr.msra.gmra.mrb[0].mxu0 %vm90_vm2, %v398_v5  ;;  %377 = vmatmul.mubr.msk.bf16.vlgmr.msra.gmra.mrb[0].mxu1 %vm90_vm2, %v399_v6 }
  0x13   :  { %380 = vmatprep.mubr.msk.bf16.mxu1 %vm412_vm1, %v411_v0 }
  0x1a   :  { %381 = vmatmul.mubr.msk.bf16.gmra.mrb[4].mxu1 %vm90_vm2, %v400_v7 }
  0xe5   :  { %v134_v10 = vpop.f32.mrb[0].mxu0  ;;  %v142_v11 = vpop.f32.mrb[0].mxu1 }
  0xe6   :  { %v156_v14 = vadd.f32 %v134_v10, %v35_v8  ;;  %v158_v15 = vadd.f32 %v142_v11, %v37_v9  ;;  %v374_v16 = vpop.f32.mrb[1].mxu0  ;;  %v378_v17 = vpop.f32.mrb[1].mxu1 }
  0xe7   :  { %v137_v18 = vpop.f32.mrb[2].mxu0  ;;  %v145_v19 = vpop.f32.mrb[2].mxu1 }
  0xe8   :  { %162 = vst.msk [vmem:[#allocation2] sm:$0xff] %vm28_vm0, %v156_v14  ;;  %164 = vst.msk [vmem:[#allocation2 + $0x10] sm:$0xff] %vm28_vm0, %v158_v15  ;;  %v157_v20 = vadd.f32 %v137_v18, %v36_v12  ;;  %v159_v21 = vadd.f32 %v145_v19, %v38_v13  ;;  %v375_v22 = vpop.f32.mrb[3].mxu0  ;;  %v379_v23 = vpop.f32.mrb[3].mxu1 }
  0xea   :  { %163 = vst.msk [vmem:[#allocation2 + $0x8] sm:$0xff] %vm28_vm0, %v157_v20  ;;  %165 = vst.msk [vmem:[#allocation2 + $0x18] sm:$0xff] %vm28_vm0, %v159_v21 }
  0xed   :  { %v150_v27 = vpop.f32.mrb[4].mxu1 }
  0xee   :  { %v160_v29 = vadd.f32 %v150_v27, %v39_v24  ;;  %v382_v30 = vpop.f32.mrb[5].mxu1 }
  0xef   :  { %v153_v33 = vpop.f32.mrb[6].mxu1  ;;  %v173_v34 = vld [vmem:[#allocation2 + $0x10] sm:$0xff]  ;;  %v171_v35 = vld [vmem:[#allocation2] sm:$0xff] }
  0xf0   :  { %167 = vst.msk [vmem:[#allocation2 + $0x20] sm:$0x3] %vm33_vm3, %v160_v29  ;;  %v383_v36 = vpop.f32.mrb[7].mxu1  ;;  %v185_v37 = vadd.f32 %v335_v28, %v173_v34  ;;  %v183_v38 = vadd.f32 %v335_v28, %v171_v35 }
  0xf1   :  { %v174_v41 = vld [vmem:[#allocation2 + $0x18] sm:$0xff]  ;;  %v172_v42 = vld [vmem:[#allocation2 + $0x8] sm:$0xff]  ;;  %v336_v36 = vld [vmem:[%s533_s4] ss:$0 sm:$0xff] }
  0xf2   :  { %v200_v43 = vadd.f32 %v354_v31, %v185_v37  ;;  %v198_v44 = vadd.f32 %v350_v32, %v183_v38  ;;  %v186_v45 = vadd.f32 %v335_v28, %v174_v41  ;;  %v184_v46 = vadd.f32 %v335_v28, %v172_v42  ;;  %v337_v38 = vld [vmem:[%s534_s5] ss:$0 sm:$0xff] }
  0xf4   :  { %v209_v48 = vsel %vm28_vm0, %v200_v43, 0.0  ;;  %v203_v49 = vsel %vm28_vm0, %v198_v44, 0.0  ;;  %v201_v50 = vadd.f32 %v355_v39, %v186_v45  ;;  %v199_v51 = vadd.f32 %v351_v40, %v184_v46 }
  0xf5   :  { %210 = vadd.xlane.f32.xlu1 %v209_v48  ;;  %204 = vadd.xlane.f32.xlu0 %v203_v49 }
  0xf6   :  { %v212_v54 = vsel %vm28_vm0, %v201_v50, 0.0  ;;  %v206_v55 = vsel %vm28_vm0, %v199_v51, 0.0 }
  0xf7   :  { %v175_v53 = vld [vmem:[#allocation2 + $0x20] sm:$0x3] }
  0xf8   :  { %v187_v56 = vadd.f32 %v335_v28, %v175_v53 }
  0xf9   :  { %213 = vadd.xlane.f32.xlu1 %v212_v54  ;;  %207 = vadd.xlane.f32.xlu0 %v206_v55 }
  0xfa   :  { %v202_v57 = vadd.f32 %v197_v52, %v187_v56 }
  0xfc   :  { %v215_v58 = vsel %vm33_vm3, %v202_v57, 0.0 }
  0xfd   :  { %216 = vadd.xlane.f32.xlu0 %v215_v58 }
 0x182   :  { %v211_v59 = vpop.xlane.xlu1 %210  ;;  %v205_v60 = vpop.xlane.xlu0 %204 }
 0x183   :  { %v221_v61 = vmul.f32 0.03125, %v211_v59  ;;  %v219_v62 = vmul.f32 0.03125, %v205_v60 }
 0x185   :  { %v226_v63 = vsub.f32 %v200_v43, %v221_v61  ;;  %v224_v0 = vsub.f32 %v198_v44, %v219_v62 }
 0x186   :  { %v214_v1 = vpop.xlane.xlu1 %213  ;;  %v208_v2 = vpop.xlane.xlu0 %207 }
 0x187   :  { %v222_v3 = vmul.f32 0.03125, %v214_v1  ;;  %v220_v4 = vmul.f32 0.03125, %v208_v2  ;;  %v229_v5 = vmul.f32 %v224_v0, %v224_v0  ;;  %v231_v9 = vmul.f32 %v226_v63, %v226_v63 }
 0x189   :  { %v227_v6 = vsub.f32 %v201_v50, %v222_v3  ;;  %v225_v7 = vsub.f32 %v199_v51, %v220_v4  ;;  %v234_v8 = vsel %vm28_vm0, %v229_v5, 0.0  ;;  %v240_v14 = vsel %vm28_vm0, %v231_v9, 0.0 }
 0x18a   :  { %235 = vadd.xlane.f32.xlu1 %v234_v8  ;;  %v217_v10 = vpop.xlane.xlu0 %216 }
 0x18b   :  { %v223_v11 = vmul.f32 0.03125, %v217_v10  ;;  %v230_v12 = vmul.f32 %v225_v7, %v225_v7  ;;  %v232_v16 = vmul.f32 %v227_v6, %v227_v6 }
 0x18d   :  { %v228_v13 = vsub.f32 %v202_v57, %v223_v11  ;;  %v237_v15 = vsel %vm28_vm0, %v230_v12, 0.0  ;;  %v243_v18 = vsel %vm28_vm0, %v232_v16, 0.0 }
 0x18e   :  { %241 = vadd.xlane.f32.xlu1 %v240_v14  ;;  %238 = vadd.xlane.f32.xlu0 %v237_v15 }
 0x18f   :  { %v233_v17 = vmul.f32 %v228_v13, %v228_v13 }
 0x191   :  { %v246_v19 = vsel %vm33_vm3, %v233_v17, 0.0 }
 0x192   :  { %244 = vadd.xlane.f32.xlu0 %v243_v18  ;;  %247 = vadd.xlane.f32.xlu1 %v246_v19 }
 0x217   :  { %v236_v20 = vpop.xlane.xlu1 %235 }
 0x218   :  { %v249_v21 = vmul.f32 0.03125, %v236_v20 }
 0x21a   :  { %v254_v22 = vadd.f32 1e-05, %v249_v21 }
 0x21b   :  { %v242_v23 = vpop.xlane.xlu1 %241  ;;  %v239_v24 = vpop.xlane.xlu0 %238 }
 0x21c   :  { %401 = vrsqrt.f32 %v254_v22  ;;  %v251_v25 = vmul.f32 0.03125, %v242_v23  ;;  %v250_v26 = vmul.f32 0.03125, %v239_v24 }
 0x21e   :  { %v256_v27 = vadd.f32 1e-05, %v251_v25  ;;  %v255_v28 = vadd.f32 1e-05, %v250_v26 }
 0x21f   :  { %v248_v29 = vpop.xlane.xlu1 %247  ;;  %v245_v30 = vpop.xlane.xlu0 %244 }
 0x220   :  { %403 = vrsqrt.f32 %v256_v27  ;;  %v253_v31 = vmul.f32 0.03125, %v248_v29  ;;  %v252_v32 = vmul.f32 0.03125, %v245_v30 }
 0x221   :  { %405 = vrsqrt.f32 %v255_v28 }
 0x222   :  { %v258_v33 = vadd.f32 1e-05, %v253_v31  ;;  %v257_v34 = vadd.f32 1e-05, %v252_v32 }
 0x224   :  { %407 = vrsqrt.f32 %v258_v33 }
 0x225   :  { %409 = vrsqrt.f32 %v257_v34 }
 0x226   :  { %v402_v35 = vpop.eup %401 }
 0x227   :  { %v264_v37 = vmul.f32 %v402_v35, %v224_v0 }
 0x229   :  { %v276_v39 = vmul.f32 %v336_v36, %v264_v37 }
 0x22a   :  { %v404_v40 = vpop.eup %403 }
 0x22b   :  { %v406_v41 = vpop.eup %405  ;;  %v288_v42 = vadd.f32 %v337_v38, %v276_v39  ;;  %v266_v43 = vmul.f32 %v404_v40, %v226_v63 }
 0x22c   :  { %v265_v44 = vmul.f32 %v406_v41, %v225_v7 }
 0x22d   :  { %v343_v45 = vpack.c.bf16 %v288_v42, %v288_v42  ;;  %v278_v46 = vmul.f32 %v336_v36, %v266_v43 }
 0x22e   :  { %v408_v47 = vpop.eup %407  ;;  %v277_v48 = vmul.f32 %v336_v36, %v265_v44 }
 0x22f   :  { %v410_v49 = vpop.eup %409  ;;  %315 = vst.msk [vmem:[%s535_s6] sm:$0xf] %vm314_vm4, %v343_v45  ;;  %v290_v50 = vadd.f32 %v337_v38, %v278_v46  ;;  %v268_v51 = vmul.f32 %v408_v47, %v228_v13 }
 0x230   :  { %v289_v52 = vadd.f32 %v337_v38, %v277_v48  ;;  %v267_v53 = vmul.f32 %v410_v49, %v227_v6 }
 0x231   :  { %v345_v54 = vpack.c.bf16 %v290_v50, %v290_v50  ;;  %v280_v55 = vmul.f32 %v336_v36, %v268_v51 }
 0x232   :  { %v344_v56 = vpack.c.bf16 %v289_v52, %v289_v52  ;;  %v279_v57 = vmul.f32 %v336_v36, %v267_v53 }
 0x233   :  { %317 = vst.msk [vmem:[%s535_s6 + $0x8] sm:$0xf] %vm314_vm4, %v345_v54  ;;  %v292_v58 = vadd.f32 %v337_v38, %v280_v55 }
 0x234   :  { %316 = vst.msk [vmem:[%s535_s6 + $0x4] sm:$0xf] %vm314_vm4, %v344_v56  ;;  %v291_v59 = vadd.f32 %v337_v38, %v279_v57 }
 0x235   :  { %v347_v60 = vpack.c.bf16 %v292_v58, %v292_v58 }
 0x236   :  { %v346_v61 = vpack.c.bf16 %v291_v59, %v291_v59 }
 0x237   :  { %320 = vst.msk [vmem:[%s535_s6 + $0x10] sm:$0x1] %vm319_vm5, %v347_v60 }
 0x238   :  { %318 = vst.msk [vmem:[%s535_s6 + $0xc] sm:$0xf] %vm314_vm4, %v346_v61 }

// kernel: _lambda_.23
= control target key start
LH: loop header
LB: loop body
LE: loop exit
PB: predicated region body
PF: predicated region fallthrough
CT: control target
= control target key end

     0   :  { %v158_v1 = vmov 0.0   ;;  %vm159_vm0 = vmmov 0   ;;  %vm20_vm1 = vcmask 25600   ;;  %s208_s0 = inlined_call_operand.vmem [shape: bf16[2,32], index: 0, kind: input, shape index: {}]   ;;  %s209_s1 = inlined_call_operand.vmem [shape: bf16[32,4], index: 1, kind: input, shape index: {}]   ;;  %s210_s2 = inlined_call_operand.vmem [shape: f32[1,4], index: 2, kind: input, shape index: {}]   ;;  %s211_s3 = inlined_call_operand.hbm [shape: f32[2,4], index: 3, kind: output, shape index: {}]  }
   0x1   :  { %v132_v0 = vld [vmem:[%s209_s1] sm:$0xff]   ;;  %121 = vmatprep.subr.bf16.mxu0 %v158_v1  ;;  %v133_v2 = vld [vmem:[%s209_s1 + $0x8] sm:$0xff]   ;;  %125 = vmatprep.mubr.msk.bf16.mxu0 %vm159_vm0, %v158_v1 }
   0x2   :  { %122 = vmatpush3.bf16.msra.mxu0 %v132_v0 }
   0x3   :  { %8 = vsyncpa [#allocation4], 0  ;;  %123 = vmatprep.subr.bf16.mxu0 %v158_v1  ;;  %21 = vst.msk [vmem:[#allocation2] sm:$0x3] %vm20_vm1, %v158_v1  ;;  %v23_v3 = vld [vmem:[%s208_s0] sm:$0x1] }
   0x4   :  { %vm40_vm2 = vcmask 261120   ;;  %v117_v10 = vld [vmem:[%s210_s2] ss:$0 sm:$0xff]  ;;  %s160_s19 = smov [#allocation3]  }
   0x5   :  { %s106_s20 = sshll.u32 %s160_s19, 4  ;;  %s107_s20 = int_to_ptr.vmem [resolvable:$true] %s106_s20 }
   0x6   :  { %124 = vmatpush3.bf16.msra.mxu0 %v133_v2  ;;  %s134_s0 = scalar_lea.vmem %s107_s20, 32  ;;  %p139_p1 = scmp.lt.s32.totalorder %s107_s20, %s107_s20 }
   0x7   :  { %p135_p0 = scmp.ne.s32.totalorder %s107_s20, %s134_s0  ;;  %p140_p2 = scmp.lt.s32.totalorder %s134_s0, %s134_s0 }
   0x9   :  { %126 = vmatmul.mubr.msk.bf16.vlgmr.msra.gmra.mrb[0].mxu0 %vm40_vm2, %v23_v3  ;;  %p141_p3 = por %p140_p2, %p139_p1 }
   0xa   :  { %v22_v4 = vld [vmem:[#allocation2] sm:$0x3] }
   0xb   :  { %p142_p4 = pnand %p141_p3, %p135_p0 }
  0xdc   :  { %v78_v5 = vpop.f32.mrb[0].mxu0 }
  0xdd   :  { %v84_v6 = vadd.f32 %v78_v5, %v22_v4  ;;  %v127_v7 = vpop.f32.mrb[1].mxu0 }
  0xde   :  { %v81_v8 = vpop.f32.mrb[2].mxu0 }
  0xdf   :  { %86 = vst.msk [vmem:[#allocation2] sm:$0x3] %vm20_vm1, %v84_v6  ;;  %v128_v9 = vpop.f32.mrb[3].mxu0 }
  0xe6   :  { %v90_v11 = vld [vmem:[#allocation2] sm:$0x3] }
  0xe7   :  { %v98_v12 = vadd.f32 %v117_v10, %v90_v11 }
  0xe9   :  { %99 = vst.msk [vmem:[#allocation3] sm:$0x3] %vm20_vm1, %v98_v12 }
  0xea   :  { %145 = shalt.err (!%p142_p4)
}
  0xeb   :  { %s146_s23 = scalar_lea.hbm %s211_s3, 32 }
  0xec   :  { %p147_p5 = scmp.ne.s32.totalorder %s211_s3, %s146_s23  ;;  %p150_p6 = scmp.lt.u32.totalorder %s146_s23, %s211_s3 }
  0xee   :  { %p152_p7 = pnand %p150_p6, %p147_p5 }
  0xf0   :  { %155 = shalt.err (!%p152_p7)
}
  0xf1   :  { %109 = dma.vmem_to_hbm [thread:$0]  %s107_s20, 32, %s211_s3, [#allocation4]  }
  0xf2   :  { %156 = dma.done.wait [#allocation4], 32  }
  0xf3   :  { %157 = vsyncadd [#allocation4], 4294967264 }
  0xf4   :  { %113 = vsyncpa [#allocation4], 1 }

</bundles_post_ra>
